<compile_context>
chip_gen: v7x
topology: tpu7x:2x2x1
jax: 0.10.0
libtpu: 0.0.40
codegen_flags: <defaults>
</compile_context>

<pallas_src>
import math
import jax
import jax.numpy as jnp
from jax.experimental import pallas as pl
from jax.experimental.pallas import tpu as pltpu

# ---------------- model hyper-params (small, structure-consistent) ----------
B, S = 2, 8            # batch, sequence length
H = 128                # hidden size (XLM uses 2048)
N_HEADS = 2
D_HEAD = H // N_HEADS
FFN = 4 * H
N_LAYERS = 2
VOCAB = 64
MAX_POS = 16
N_LABELS = 4           # number_labels
LANE = 128             # lane-padded width for the classification head output
LN_EPS = 1e-12


def _layernorm(x, g, b):
    mu = jnp.mean(x, axis=-1, keepdims=True)
    var = jnp.mean((x - mu) ** 2, axis=-1, keepdims=True)
    return (x - mu) * jax.lax.rsqrt(var + LN_EPS) * g + b


def _split_heads(mat, base):
    """[S, 3H] -> [N_HEADS, S, D_HEAD]: D_HEAD-wide column groups starting at `base`,
    stacked along a new leading (untiled) axis -- no lane-dim concatenate."""
    return jnp.stack(
        [mat[:, base + h * D_HEAD: base + (h + 1) * D_HEAD] for h in range(N_HEADS)],
        axis=0)


# ---------------------------- fused backbone kernel --------------------------
def backbone_kernel(x0_ref, bias_ref, mrow_ref, ln_eg_ref, ln_eb_ref,
                    wqkv_ref, bqkv_ref, wo_ref, bo_ref, g1_ref, c1_ref,
                    w1_ref, d1_ref, w2_ref, d2_ref, g2_ref, c2_ref,
                    wout_ref, bout_ref,
                    logits_ref, x_scr):
    l = pl.program_id(1)
    mrow = mrow_ref[0]                                     # [S, 1] pad-mask column

    # ---- l == 0: (tok+pos) LayerNorm + pad mask initializes the resident stream
    @pl.when(l == 0)
    def _init():
        x_scr[...] = _layernorm(x0_ref[0], ln_eg_ref[...], ln_eb_ref[...]) * mrow

    x = x_scr[...]                                         # [S, H] f32 residual stream

    # ---- attention block: fused QKV -> batched-head attention -> proj -> +res -> LN1
    qkv = jnp.dot(x.astype(jnp.bfloat16), wqkv_ref[0],
                  preferred_element_type=jnp.float32) + bqkv_ref[0]        # [S, 3H]
    q = _split_heads(qkv, 0) * (1.0 / math.sqrt(D_HEAD))                   # [NH, S, dH]
    k = _split_heads(qkv, H)
    v = _split_heads(qkv, 2 * H)

    s = jnp.einsum('hqd,hkd->hqk', q, k,
                   preferred_element_type=jnp.float32)                     # [NH, S, S]
    s = s + bias_ref[0]                                    # additive key-padding bias
    s = s - jnp.max(s, axis=-1, keepdims=True)
    p = jnp.exp(s)
    p = p * pl.reciprocal(jnp.sum(p, axis=-1, keepdims=True), approx=True)
    ctx = jnp.einsum('hqk,hkd->hqd', p, v,
                     preferred_element_type=jnp.float32)                   # [NH, S, dH]

    # out-projection: head-batched matmul vs head-stacked Wo, reduce over heads
    attn = jnp.einsum('hsd,hdk->hsk', ctx.astype(jnp.bfloat16), wo_ref[0],
                      preferred_element_type=jnp.float32).sum(axis=0) + bo_ref[0]
    x1 = _layernorm(x + attn, g1_ref[0], c1_ref[0])

    # ---- FFN block: lin1 -> gelu -> lin2 -> +res -> LN2 -> pad mask
    hmid = jnp.dot(x1.astype(jnp.bfloat16), w1_ref[0],
                   preferred_element_type=jnp.float32) + d1_ref[0]
    # TODO(synk): HF XLM uses exact erf GELU; tanh approximation used for lowering.
    hmid = jax.nn.gelu(hmid, approximate=True)
    ffn = jnp.dot(hmid.astype(jnp.bfloat16), w2_ref[0],
                  preferred_element_type=jnp.float32) + d2_ref[0]
    x2 = _layernorm(x1 + ffn, g2_ref[0], c2_ref[0]) * mrow
    x_scr[...] = x2

    # ---- classification head fused into the final layer step (lane-padded store)
    @pl.when(l == pl.num_programs(1) - 1)
    def _head():
        last = x2[S - 1:S, :]                              # hidden_states[:, -1, :]
        logits_ref[0] = (jnp.dot(last, wout_ref[...],
                                 preferred_element_type=jnp.float32)
                         + bout_ref[...])


# ---------------------------- BlockSpec helpers -------------------------------
def _wspec(shape):
    """Layer-stacked parameter: one layer slice per grid step, indexed by l."""
    nd = len(shape)
    return pl.BlockSpec((1,) + shape[1:], lambda b, l: (l,) + (0,) * (nd - 1))


def _bspec(shape):
    """Per-batch-element input, indexed by b."""
    nd = len(shape)
    return pl.BlockSpec((1,) + shape[1:], lambda b, l: (b,) + (0,) * (nd - 1))


def _cspec(shape):
    """Constant (same block for every grid step)."""
    nd = len(shape)
    return pl.BlockSpec(shape, lambda b, l: (0,) * nd)


def xlm_backbone(x0, attn_bias, mask_rows, p):
    return pl.pallas_call(
        backbone_kernel,
        out_shape=jax.ShapeDtypeStruct((B, 1, LANE), jnp.float32),
        grid=(B, N_LAYERS),
        in_specs=[
            _bspec((B, S, H)),                    # x0 = tok + pos embeddings
            _bspec((B, 1, S)),                    # additive attention bias (key pad)
            _bspec((B, S, 1)),                    # row pad mask
            _cspec((1, H)), _cspec((1, H)),       # embedding LayerNorm g / b
            _wspec((N_LAYERS, H, 3 * H)),         # wqkv (bf16)
            _wspec((N_LAYERS, 1, 3 * H)),         # bqkv
            _wspec((N_LAYERS, N_HEADS, D_HEAD, H)),  # wo, head-stacked (bf16)
            _wspec((N_LAYERS, 1, H)),             # bo
            _wspec((N_LAYERS, 1, H)), _wspec((N_LAYERS, 1, H)),     # ln1 g / b
            _wspec((N_LAYERS, H, FFN)),           # w1 (bf16)
            _wspec((N_LAYERS, 1, FFN)),           # b1
            _wspec((N_LAYERS, FFN, H)),           # w2 (bf16)
            _wspec((N_LAYERS, 1, H)),             # b2
            _wspec((N_LAYERS, 1, H)), _wspec((N_LAYERS, 1, H)),     # ln2 g / b
            _cspec((H, LANE)), _cspec((1, LANE)),                   # head W / b (padded)
        ],
        out_specs=pl.BlockSpec((1, 1, LANE), lambda b, l: (b, 0, 0)),
        scratch_shapes=[pltpu.VMEM((S, H), jnp.float32)],           # resident residual x
        compiler_params=pltpu.CompilerParams(
            dimension_semantics=("parallel", "arbitrary")),
    )(x0, attn_bias, mask_rows,
      p["ln_emb_g"], p["ln_emb_b"],
      p["wqkv"], p["bqkv"], p["wo"], p["bo"], p["ln1_g"], p["ln1_b"],
      p["w1"], p["b1"], p["w2"], p["b2"], p["ln2_g"], p["ln2_b"],
      p["out_w_pad"], p["out_b_pad"])


# ---------------------------- parameter init ---------------------------------
def init_params(key):
    scale = 0.02

    def nrm(k, shape):
        return scale * jax.random.normal(k, shape, dtype=jnp.float32)

    keys = iter(jax.random.split(key, 3 + N_LAYERS * 6))
    params = {
        "tok_emb": nrm(next(keys), (VOCAB, H)),
        "pos_emb": nrm(next(keys), (MAX_POS, H)),
        "ln_emb_g": jnp.ones((1, H), jnp.float32),
        "ln_emb_b": jnp.zeros((1, H), jnp.float32),
    }
    out_w = nrm(next(keys), (H, N_LABELS))
    params["out_w_pad"] = jnp.zeros((H, LANE), jnp.float32).at[:, :N_LABELS].set(out_w)
    params["out_b_pad"] = jnp.zeros((1, LANE), jnp.float32)

    wqkv, wo, w1, w2 = [], [], [], []
    for _ in range(N_LAYERS):
        wq = nrm(next(keys), (H, H))
        wk = nrm(next(keys), (H, H))
        wv = nrm(next(keys), (H, H))
        wqkv.append(jnp.concatenate([wq, wk, wv], axis=1))          # [H, 3H]
        wo.append(nrm(next(keys), (H, H)).reshape(N_HEADS, D_HEAD, H))  # head-stacked
        w1.append(nrm(next(keys), (H, FFN)))
        w2.append(nrm(next(keys), (FFN, H)))

    params["wqkv"] = jnp.stack(wqkv).astype(jnp.bfloat16)           # [L, H, 3H]
    params["wo"] = jnp.stack(wo).astype(jnp.bfloat16)               # [L, NH, dH, H]
    params["w1"] = jnp.stack(w1).astype(jnp.bfloat16)               # [L, H, FFN]
    params["w2"] = jnp.stack(w2).astype(jnp.bfloat16)               # [L, FFN, H]
    params["bqkv"] = jnp.zeros((N_LAYERS, 1, 3 * H), jnp.float32)
    params["bo"] = jnp.zeros((N_LAYERS, 1, H), jnp.float32)
    params["b1"] = jnp.zeros((N_LAYERS, 1, FFN), jnp.float32)
    params["b2"] = jnp.zeros((N_LAYERS, 1, H), jnp.float32)
    params["ln1_g"] = jnp.ones((N_LAYERS, 1, H), jnp.float32)
    params["ln1_b"] = jnp.zeros((N_LAYERS, 1, H), jnp.float32)
    params["ln2_g"] = jnp.ones((N_LAYERS, 1, H), jnp.float32)
    params["ln2_b"] = jnp.zeros((N_LAYERS, 1, H), jnp.float32)
    return params


# ---------------------------- forward pass ------------------------------------
@jax.jit
def xlm_forward(params, ids, mask):
    """ids:[B,S] int32, mask:[B,S] -> logits [B, N_LABELS]"""
    mask_f = mask.astype(jnp.float32)
    attn_bias = ((mask_f - 1.0) * 1e30).reshape(B, 1, S)     # 0 at valid, -1e30 at pad
    mask_rows = mask_f.reshape(B, S, 1)

    # embedding gather stays in XLA (tiny at this scale); add fused into kernel input
    tok = jnp.take(params["tok_emb"], ids, axis=0)           # [B,S,H]
    x0 = tok + params["pos_emb"][None, :S, :]

    logits_pad = xlm_backbone(x0, attn_bias, mask_rows, params)   # [B, 1, LANE]
    return logits_pad[:, 0, :N_LABELS]


# ---------------------------- main --------------------------------------------
if __name__ == "__main__":
    key = jax.random.PRNGKey(0)
    k_param, k_ids = jax.random.split(key)

    params = init_params(k_param)
    ids = jax.random.randint(k_ids, (B, S), 0, VOCAB, dtype=jnp.int32)
    # batch 0 fully valid, batch 1 has 2 padded positions at the end
    mask = jnp.array(
        [[1, 1, 1, 1, 1, 1, 1, 1],
         [1, 1, 1, 1, 1, 1, 0, 0]], dtype=jnp.float32)

    logits = xlm_forward(params, ids, mask)
    jax.block_until_ready(logits)
    assert logits.shape == (B, N_LABELS)
    assert bool(jnp.all(jnp.isfinite(logits)))
    print("KERNEL_OK")
</pallas_src>

<mosaic_0001>
module attributes {stable_mosaic.version = 11 : i64} {
  func.func @backbone_kernel(%arg0: i32, %arg1: i32, %arg2: memref<1x8x128xf32, #tpu.memory_space<vmem>>, %arg3: memref<1x1x8xf32, #tpu.memory_space<vmem>>, %arg4: memref<1x8x1xf32, #tpu.memory_space<vmem>>, %arg5: memref<1x128xf32, #tpu.memory_space<vmem>>, %arg6: memref<1x128xf32, #tpu.memory_space<vmem>>, %arg7: memref<1x128x384xbf16, #tpu.memory_space<vmem>>, %arg8: memref<1x1x384xf32, #tpu.memory_space<vmem>>, %arg9: memref<1x2x64x128xbf16, #tpu.memory_space<vmem>>, %arg10: memref<1x1x128xf32, #tpu.memory_space<vmem>>, %arg11: memref<1x1x128xf32, #tpu.memory_space<vmem>>, %arg12: memref<1x1x128xf32, #tpu.memory_space<vmem>>, %arg13: memref<1x128x512xbf16, #tpu.memory_space<vmem>>, %arg14: memref<1x1x512xf32, #tpu.memory_space<vmem>>, %arg15: memref<1x512x128xbf16, #tpu.memory_space<vmem>>, %arg16: memref<1x1x128xf32, #tpu.memory_space<vmem>>, %arg17: memref<1x1x128xf32, #tpu.memory_space<vmem>>, %arg18: memref<1x1x128xf32, #tpu.memory_space<vmem>>, %arg19: memref<128x128xf32, #tpu.memory_space<vmem>>, %arg20: memref<1x128xf32, #tpu.memory_space<vmem>>, %arg21: memref<1x1x128xf32, #tpu.memory_space<vmem>>, %arg22: memref<8x128xf32, #tpu.memory_space<vmem>>) attributes {dimension_semantics = [#tpu.dimension_semantics<parallel>, #tpu.dimension_semantics<arbitrary>], iteration_bounds = array<i64: 2, 2>, scalar_prefetch = 0 : i64, scratch_operands = 1 : i64, tpu.core_type = #tpu.core_type<tc>, window_params = [{transform_indices = @transform_0, window_bounds = array<i64: 1, 8, 128>}, {transform_indices = @transform_1, window_bounds = array<i64: 1, 1, 8>}, {transform_indices = @transform_2, window_bounds = array<i64: 1, 8, 1>}, {pipeline_mode = #tpu.pipeline_mode<synchronous>, transform_indices = @transform_3, window_bounds = array<i64: 1, 128>}, {pipeline_mode = #tpu.pipeline_mode<synchronous>, transform_indices = @transform_4, window_bounds = array<i64: 1, 128>}, {transform_indices = @transform_5, window_bounds = array<i64: 1, 128, 384>}, {transform_indices = @transform_6, window_bounds = array<i64: 1, 1, 384>}, {transform_indices = @transform_7, window_bounds = array<i64: 1, 2, 64, 128>}, {transform_indices = @transform_8, window_bounds = array<i64: 1, 1, 128>}, {transform_indices = @transform_9, window_bounds = array<i64: 1, 1, 128>}, {transform_indices = @transform_10, window_bounds = array<i64: 1, 1, 128>}, {transform_indices = @transform_11, window_bounds = array<i64: 1, 128, 512>}, {transform_indices = @transform_12, window_bounds = array<i64: 1, 1, 512>}, {transform_indices = @transform_13, window_bounds = array<i64: 1, 512, 128>}, {transform_indices = @transform_14, window_bounds = array<i64: 1, 1, 128>}, {transform_indices = @transform_15, window_bounds = array<i64: 1, 1, 128>}, {transform_indices = @transform_16, window_bounds = array<i64: 1, 1, 128>}, {pipeline_mode = #tpu.pipeline_mode<synchronous>, transform_indices = @transform_17, window_bounds = array<i64: 128, 128>}, {pipeline_mode = #tpu.pipeline_mode<synchronous>, transform_indices = @transform_18, window_bounds = array<i64: 1, 128>}, {transform_indices = @transform_19, window_bounds = array<i64: 1, 1, 128>}]} {
    %c0 = arith.constant 0 : index
    %c0_0 = arith.constant 0 : index
    %c0_1 = arith.constant 0 : index
    %0 = vector.load %arg4[%c0, %c0_0, %c0_1] : memref<1x8x1xf32, #tpu.memory_space<vmem>>, vector<1x8x1xf32>
    %1 = vector.shape_cast %0 : vector<1x8x1xf32> to vector<8x1xf32>
    %c0_i32 = arith.constant 0 : i32
    %2 = arith.cmpi eq, %arg1, %c0_i32 : i32
    %3 = arith.extui %2 : i1 to i32
    %c0_i32_2 = arith.constant 0 : i32
    %4 = arith.cmpi ne, %3, %c0_i32_2 : i32
    scf.if %4 {
      %c0_71 = arith.constant 0 : index
      %c0_72 = arith.constant 0 : index
      %c0_73 = arith.constant 0 : index
      %146 = vector.load %arg2[%c0_71, %c0_72, %c0_73] : memref<1x8x128xf32, #tpu.memory_space<vmem>>, vector<1x8x128xf32>
      %147 = vector.shape_cast %146 : vector<1x8x128xf32> to vector<8x128xf32>
      %c0_74 = arith.constant 0 : index
      %c0_75 = arith.constant 0 : index
      %148 = vector.load %arg5[%c0_74, %c0_75] : memref<1x128xf32, #tpu.memory_space<vmem>>, vector<1x128xf32>
      %c0_76 = arith.constant 0 : index
      %c0_77 = arith.constant 0 : index
      %149 = vector.load %arg6[%c0_76, %c0_77] : memref<1x128xf32, #tpu.memory_space<vmem>>, vector<1x128xf32>
      %cst_78 = arith.constant dense<0.000000e+00> : vector<8xf32>
      %150 = vector.multi_reduction <add>, %147, %cst_78 [1] : vector<8x128xf32> to vector<8xf32>
      %151 = vector.shape_cast %150 : vector<8xf32> to vector<8x1xf32>
      %cst_79 = arith.constant 1.280000e+02 : f32
      %152 = vector.broadcast %cst_79 : f32 to vector<8x1xf32>
      %153 = arith.divf %151, %152 : vector<8x1xf32>
      %154 = vector.broadcast %153 : vector<8x1xf32> to vector<8x128xf32>
      %155 = arith.subf %147, %154 : vector<8x128xf32>
      %156 = arith.mulf %155, %155 : vector<8x128xf32>
      %cst_80 = arith.constant dense<0.000000e+00> : vector<8xf32>
      %157 = vector.multi_reduction <add>, %156, %cst_80 [1] : vector<8x128xf32> to vector<8xf32>
      %158 = vector.shape_cast %157 : vector<8xf32> to vector<8x1xf32>
      %cst_81 = arith.constant 1.280000e+02 : f32
      %159 = vector.broadcast %cst_81 : f32 to vector<8x1xf32>
      %160 = arith.divf %158, %159 : vector<8x1xf32>
      %161 = vector.broadcast %153 : vector<8x1xf32> to vector<8x128xf32>
      %162 = arith.subf %147, %161 : vector<8x128xf32>
      %cst_82 = arith.constant 9.99999996E-13 : f32
      %163 = vector.broadcast %cst_82 : f32 to vector<8x1xf32>
      %164 = arith.addf %160, %163 : vector<8x1xf32>
      %165 = math.rsqrt %164 : vector<8x1xf32>
      %166 = vector.broadcast %165 : vector<8x1xf32> to vector<8x128xf32>
      %167 = arith.mulf %162, %166 : vector<8x128xf32>
      %168 = vector.broadcast %148 : vector<1x128xf32> to vector<8x128xf32>
      %169 = arith.mulf %167, %168 : vector<8x128xf32>
      %170 = vector.broadcast %149 : vector<1x128xf32> to vector<8x128xf32>
      %171 = arith.addf %169, %170 : vector<8x128xf32>
      %172 = vector.broadcast %1 : vector<8x1xf32> to vector<8x128xf32>
      %173 = arith.mulf %171, %172 : vector<8x128xf32>
      %c0_83 = arith.constant 0 : index
      %c0_84 = arith.constant 0 : index
      %174 = vector.load %arg22[%c0_83, %c0_84] : memref<8x128xf32, #tpu.memory_space<vmem>>, vector<8x128xf32>
      tpu.vector_store %arg22[%c0_83, %c0_84], %173 {strides = array<i32>} : memref<8x128xf32, #tpu.memory_space<vmem>>, vector<8x128xf32>,
    } else {
    }
    %c0_3 = arith.constant 0 : index
    %c0_4 = arith.constant 0 : index
    %5 = vector.load %arg22[%c0_3, %c0_4] : memref<8x128xf32, #tpu.memory_space<vmem>>, vector<8x128xf32>
    %6 = arith.truncf %5 : vector<8x128xf32> to vector<8x128xbf16>
    %c0_5 = arith.constant 0 : index
    %c0_6 = arith.constant 0 : index
    %c0_7 = arith.constant 0 : index
    %7 = vector.load %arg7[%c0_5, %c0_6, %c0_7] : memref<1x128x384xbf16, #tpu.memory_space<vmem>>, vector<1x128x384xbf16>
    %8 = vector.shape_cast %7 : vector<1x128x384xbf16> to vector<128x384xbf16>
    %cst = arith.constant dense<0.000000e+00> : vector<8x384xf32>
    %9 = tpu.matmul %6, %8, %cst {dimension_numbers = #tpu.dot_dimension_numbers<[1], [0], [0], [1], [0, 0, 1, 1], [], []>} : vector<8x128xbf16>, vector<128x384xbf16>, vector<8x384xf32> -> vector<8x384xf32>
    %c0_8 = arith.constant 0 : index
    %c0_9 = arith.constant 0 : index
    %c0_10 = arith.constant 0 : index
    %10 = vector.load %arg8[%c0_8, %c0_9, %c0_10] : memref<1x1x384xf32, #tpu.memory_space<vmem>>, vector<1x1x384xf32>
    %11 = vector.shape_cast %10 : vector<1x1x384xf32> to vector<1x384xf32>
    %12 = vector.broadcast %11 : vector<1x384xf32> to vector<8x384xf32>
    %13 = arith.addf %9, %12 : vector<8x384xf32>
    %14 = vector.extract_strided_slice %13 {offsets = [0, 0], sizes = [8, 64], strides = [1, 1]} : vector<8x384xf32> to vector<8x64xf32>
    %15 = vector.extract_strided_slice %13 {offsets = [0, 64], sizes = [8, 64], strides = [1, 1]} : vector<8x384xf32> to vector<8x64xf32>
    %16 = vector.shape_cast %14 : vector<8x64xf32> to vector<1x8x64xf32>
    %17 = vector.shape_cast %15 : vector<8x64xf32> to vector<1x8x64xf32>
    %18 = tpu.concatenate %16, %17 in 0 : vector<1x8x64xf32>, vector<1x8x64xf32> -> vector<2x8x64xf32>
    %cst_11 = arith.constant 1.250000e-01 : f32
    %19 = vector.broadcast %cst_11 : f32 to vector<2x8x64xf32>
    %20 = arith.mulf %18, %19 : vector<2x8x64xf32>
    %21 = vector.extract_strided_slice %13 {offsets = [0, 128], sizes = [8, 64], strides = [1, 1]} : vector<8x384xf32> to vector<8x64xf32>
    %22 = vector.extract_strided_slice %13 {offsets = [0, 192], sizes = [8, 64], strides = [1, 1]} : vector<8x384xf32> to vector<8x64xf32>
    %23 = vector.shape_cast %21 : vector<8x64xf32> to vector<1x8x64xf32>
    %24 = vector.shape_cast %22 : vector<8x64xf32> to vector<1x8x64xf32>
    %25 = tpu.concatenate %23, %24 in 0 : vector<1x8x64xf32>, vector<1x8x64xf32> -> vector<2x8x64xf32>
    %26 = vector.extract_strided_slice %13 {offsets = [0, 256], sizes = [8, 64], strides = [1, 1]} : vector<8x384xf32> to vector<8x64xf32>
    %27 = vector.extract_strided_slice %13 {offsets = [0, 320], sizes = [8, 64], strides = [1, 1]} : vector<8x384xf32> to vector<8x64xf32>
    %28 = vector.shape_cast %26 : vector<8x64xf32> to vector<1x8x64xf32>
    %29 = vector.shape_cast %27 : vector<8x64xf32> to vector<1x8x64xf32>
    %30 = tpu.concatenate %28, %29 in 0 : vector<1x8x64xf32>, vector<1x8x64xf32> -> vector<2x8x64xf32>
    "tpu.trace_start"() <{level = 10 : i32, message = "hqd,hkd->hqk"}> : () -> ()
    %cst_12 = arith.constant dense<0.000000e+00> : vector<2x8x8xf32>
    %31 = tpu.matmul %20, %25, %cst_12 {dimension_numbers = #tpu.dot_dimension_numbers<[2], [2], [1], [1], [0, 0, 0, 1, 1, 1], [0], [0]>} : vector<2x8x64xf32>, vector<2x8x64xf32>, vector<2x8x8xf32> -> vector<2x8x8xf32>
    "tpu.trace_stop"() : () -> ()
    %c0_13 = arith.constant 0 : index
    %c0_14 = arith.constant 0 : index
    %c0_15 = arith.constant 0 : index
    %32 = vector.load %arg3[%c0_13, %c0_14, %c0_15] : memref<1x1x8xf32, #tpu.memory_space<vmem>>, vector<1x1x8xf32>
    %33 = vector.shape_cast %32 : vector<1x1x8xf32> to vector<1x8xf32>
    %34 = vector.shape_cast %33 : vector<1x8xf32> to vector<1x1x8xf32>
    %35 = vector.broadcast %34 : vector<1x1x8xf32> to vector<2x8x8xf32>
    %36 = arith.addf %31, %35 : vector<2x8x8xf32>
    %cst_16 = arith.constant dense<0xFF800000> : vector<2x8xf32>
    %37 = vector.multi_reduction <maximumf>, %36, %cst_16 [2] : vector<2x8x8xf32> to vector<2x8xf32>
    %38 = vector.shape_cast %37 : vector<2x8xf32> to vector<2x8x1xf32>
    %39 = vector.broadcast %38 : vector<2x8x1xf32> to vector<2x8x8xf32>
    %40 = arith.subf %36, %39 : vector<2x8x8xf32>
    %41 = math.exp %40 : vector<2x8x8xf32>
    %cst_17 = arith.constant dense<0.000000e+00> : vector<2x8xf32>
    %42 = vector.multi_reduction <add>, %41, %cst_17 [2] : vector<2x8x8xf32> to vector<2x8xf32>
    %43 = vector.shape_cast %42 : vector<2x8xf32> to vector<2x8x1xf32>
    %44 = tpu.reciprocal %43 {approx = true} : vector<2x8x1xf32> -> vector<2x8x1xf32>
    %45 = vector.broadcast %44 : vector<2x8x1xf32> to vector<2x8x8xf32>
    %46 = arith.mulf %41, %45 : vector<2x8x8xf32>
    "tpu.trace_start"() <{level = 10 : i32, message = "hqk,hkd->hqd"}> : () -> ()
    %cst_18 = arith.constant dense<0.000000e+00> : vector<2x8x64xf32>
    %47 = tpu.matmul %46, %30, %cst_18 {dimension_numbers = #tpu.dot_dimension_numbers<[2], [1], [1], [2], [0, 0, 0, 1, 1, 2], [0], [0]>} : vector<2x8x8xf32>, vector<2x8x64xf32>, vector<2x8x64xf32> -> vector<2x8x64xf32>
    "tpu.trace_stop"() : () -> ()
    %48 = arith.truncf %47 : vector<2x8x64xf32> to vector<2x8x64xbf16>
    %c0_19 = arith.constant 0 : index
    %c0_20 = arith.constant 0 : index
    %c0_21 = arith.constant 0 : index
    %c0_22 = arith.constant 0 : index
    %49 = vector.load %arg9[%c0_19, %c0_20, %c0_21, %c0_22] : memref<1x2x64x128xbf16, #tpu.memory_space<vmem>>, vector<1x2x64x128xbf16>
    %50 = vector.shape_cast %49 : vector<1x2x64x128xbf16> to vector<2x64x128xbf16>
    "tpu.trace_start"() <{level = 10 : i32, message = "hsd,hdk->hsk"}> : () -> ()
    %cst_23 = arith.constant dense<0.000000e+00> : vector<2x8x128xf32>
    %51 = tpu.matmul %48, %50, %cst_23 {dimension_numbers = #tpu.dot_dimension_numbers<[2], [1], [1], [2], [0, 0, 0, 1, 1, 2], [0], [0]>} : vector<2x8x64xbf16>, vector<2x64x128xbf16>, vector<2x8x128xf32> -> vector<2x8x128xf32>
    "tpu.trace_stop"() : () -> ()
    %cst_24 = arith.constant dense<0.000000e+00> : vector<8x128xf32>
    %52 = vector.multi_reduction <add>, %51, %cst_24 [0] : vector<2x8x128xf32> to vector<8x128xf32>
    %c0_25 = arith.constant 0 : index
    %c0_26 = arith.constant 0 : index
    %c0_27 = arith.constant 0 : index
    %53 = vector.load %arg10[%c0_25, %c0_26, %c0_27] : memref<1x1x128xf32, #tpu.memory_space<vmem>>, vector<1x1x128xf32>
    %54 = vector.shape_cast %53 : vector<1x1x128xf32> to vector<1x128xf32>
    %55 = vector.broadcast %54 : vector<1x128xf32> to vector<8x128xf32>
    %56 = arith.addf %52, %55 : vector<8x128xf32>
    %57 = arith.addf %5, %56 : vector<8x128xf32>
    %c0_28 = arith.constant 0 : index
    %c0_29 = arith.constant 0 : index
    %c0_30 = arith.constant 0 : index
    %58 = vector.load %arg11[%c0_28, %c0_29, %c0_30] : memref<1x1x128xf32, #tpu.memory_space<vmem>>, vector<1x1x128xf32>
    %59 = vector.shape_cast %58 : vector<1x1x128xf32> to vector<1x128xf32>
    %c0_31 = arith.constant 0 : index
    %c0_32 = arith.constant 0 : index
    %c0_33 = arith.constant 0 : index
    %60 = vector.load %arg12[%c0_31, %c0_32, %c0_33] : memref<1x1x128xf32, #tpu.memory_space<vmem>>, vector<1x1x128xf32>
    %61 = vector.shape_cast %60 : vector<1x1x128xf32> to vector<1x128xf32>
    %cst_34 = arith.constant dense<0.000000e+00> : vector<8xf32>
    %62 = vector.multi_reduction <add>, %57, %cst_34 [1] : vector<8x128xf32> to vector<8xf32>
    %63 = vector.shape_cast %62 : vector<8xf32> to vector<8x1xf32>
    %cst_35 = arith.constant 1.280000e+02 : f32
    %64 = vector.broadcast %cst_35 : f32 to vector<8x1xf32>
    %65 = arith.divf %63, %64 : vector<8x1xf32>
    %66 = vector.broadcast %65 : vector<8x1xf32> to vector<8x128xf32>
    %67 = arith.subf %57, %66 : vector<8x128xf32>
    %68 = arith.mulf %67, %67 : vector<8x128xf32>
    %cst_36 = arith.constant dense<0.000000e+00> : vector<8xf32>
    %69 = vector.multi_reduction <add>, %68, %cst_36 [1] : vector<8x128xf32> to vector<8xf32>
    %70 = vector.shape_cast %69 : vector<8xf32> to vector<8x1xf32>
    %cst_37 = arith.constant 1.280000e+02 : f32
    %71 = vector.broadcast %cst_37 : f32 to vector<8x1xf32>
    %72 = arith.divf %70, %71 : vector<8x1xf32>
    %73 = vector.broadcast %65 : vector<8x1xf32> to vector<8x128xf32>
    %74 = arith.subf %57, %73 : vector<8x128xf32>
    %cst_38 = arith.constant 9.99999996E-13 : f32
    %75 = vector.broadcast %cst_38 : f32 to vector<8x1xf32>
    %76 = arith.addf %72, %75 : vector<8x1xf32>
    %77 = math.rsqrt %76 : vector<8x1xf32>
    %78 = vector.broadcast %77 : vector<8x1xf32> to vector<8x128xf32>
    %79 = arith.mulf %74, %78 : vector<8x128xf32>
    %80 = vector.broadcast %59 : vector<1x128xf32> to vector<8x128xf32>
    %81 = arith.mulf %79, %80 : vector<8x128xf32>
    %82 = vector.broadcast %61 : vector<1x128xf32> to vector<8x128xf32>
    %83 = arith.addf %81, %82 : vector<8x128xf32>
    %84 = arith.truncf %83 : vector<8x128xf32> to vector<8x128xbf16>
    %c0_39 = arith.constant 0 : index
    %c0_40 = arith.constant 0 : index
    %c0_41 = arith.constant 0 : index
    %85 = vector.load %arg13[%c0_39, %c0_40, %c0_41] : memref<1x128x512xbf16, #tpu.memory_space<vmem>>, vector<1x128x512xbf16>
    %86 = vector.shape_cast %85 : vector<1x128x512xbf16> to vector<128x512xbf16>
    %cst_42 = arith.constant dense<0.000000e+00> : vector<8x512xf32>
    %87 = tpu.matmul %84, %86, %cst_42 {dimension_numbers = #tpu.dot_dimension_numbers<[1], [0], [0], [1], [0, 0, 1, 1], [], []>} : vector<8x128xbf16>, vector<128x512xbf16>, vector<8x512xf32> -> vector<8x512xf32>
    %c0_43 = arith.constant 0 : index
    %c0_44 = arith.constant 0 : index
    %c0_45 = arith.constant 0 : index
    %88 = vector.load %arg14[%c0_43, %c0_44, %c0_45] : memref<1x1x512xf32, #tpu.memory_space<vmem>>, vector<1x1x512xf32>
    %89 = vector.shape_cast %88 : vector<1x1x512xf32> to vector<1x512xf32>
    %90 = vector.broadcast %89 : vector<1x512xf32> to vector<8x512xf32>
    %91 = arith.addf %87, %90 : vector<8x512xf32>
    %92 = arith.mulf %91, %91 : vector<8x512xf32>
    %93 = arith.mulf %91, %92 : vector<8x512xf32>
    %cst_46 = arith.constant 4.471500e-02 : f32
    %94 = vector.broadcast %cst_46 : f32 to vector<8x512xf32>
    %95 = arith.mulf %94, %93 : vector<8x512xf32>
    %96 = arith.addf %91, %95 : vector<8x512xf32>
    %cst_47 = arith.constant 0.797884583 : f32
    %97 = vector.broadcast %cst_47 : f32 to vector<8x512xf32>
    %98 = arith.mulf %97, %96 : vector<8x512xf32>
    %99 = math.tanh %98 : vector<8x512xf32>
    %cst_48 = arith.constant 1.000000e+00 : f32
    %100 = vector.broadcast %cst_48 : f32 to vector<8x512xf32>
    %101 = arith.addf %100, %99 : vector<8x512xf32>
    %cst_49 = arith.constant 5.000000e-01 : f32
    %102 = vector.broadcast %cst_49 : f32 to vector<8x512xf32>
    %103 = arith.mulf %102, %101 : vector<8x512xf32>
    %104 = arith.mulf %91, %103 : vector<8x512xf32>
    %105 = arith.truncf %104 : vector<8x512xf32> to vector<8x512xbf16>
    %c0_50 = arith.constant 0 : index
    %c0_51 = arith.constant 0 : index
    %c0_52 = arith.constant 0 : index
    %106 = vector.load %arg15[%c0_50, %c0_51, %c0_52] : memref<1x512x128xbf16, #tpu.memory_space<vmem>>, vector<1x512x128xbf16>
    %107 = vector.shape_cast %106 : vector<1x512x128xbf16> to vector<512x128xbf16>
    %cst_53 = arith.constant dense<0.000000e+00> : vector<8x128xf32>
    %108 = tpu.matmul %105, %107, %cst_53 {dimension_numbers = #tpu.dot_dimension_numbers<[1], [0], [0], [1], [0, 0, 1, 1], [], []>} : vector<8x512xbf16>, vector<512x128xbf16>, vector<8x128xf32> -> vector<8x128xf32>
    %c0_54 = arith.constant 0 : index
    %c0_55 = arith.constant 0 : index
    %c0_56 = arith.constant 0 : index
    %109 = vector.load %arg16[%c0_54, %c0_55, %c0_56] : memref<1x1x128xf32, #tpu.memory_space<vmem>>, vector<1x1x128xf32>
    %110 = vector.shape_cast %109 : vector<1x1x128xf32> to vector<1x128xf32>
    %111 = vector.broadcast %110 : vector<1x128xf32> to vector<8x128xf32>
    %112 = arith.addf %108, %111 : vector<8x128xf32>
    %113 = arith.addf %83, %112 : vector<8x128xf32>
    %c0_57 = arith.constant 0 : index
    %c0_58 = arith.constant 0 : index
    %c0_59 = arith.constant 0 : index
    %114 = vector.load %arg17[%c0_57, %c0_58, %c0_59] : memref<1x1x128xf32, #tpu.memory_space<vmem>>, vector<1x1x128xf32>
    %115 = vector.shape_cast %114 : vector<1x1x128xf32> to vector<1x128xf32>
    %c0_60 = arith.constant 0 : index
    %c0_61 = arith.constant 0 : index
    %c0_62 = arith.constant 0 : index
    %116 = vector.load %arg18[%c0_60, %c0_61, %c0_62] : memref<1x1x128xf32, #tpu.memory_space<vmem>>, vector<1x1x128xf32>
    %117 = vector.shape_cast %116 : vector<1x1x128xf32> to vector<1x128xf32>
    %cst_63 = arith.constant dense<0.000000e+00> : vector<8xf32>
    %118 = vector.multi_reduction <add>, %113, %cst_63 [1] : vector<8x128xf32> to vector<8xf32>
    %119 = vector.shape_cast %118 : vector<8xf32> to vector<8x1xf32>
    %cst_64 = arith.constant 1.280000e+02 : f32
    %120 = vector.broadcast %cst_64 : f32 to vector<8x1xf32>
    %121 = arith.divf %119, %120 : vector<8x1xf32>
    %122 = vector.broadcast %121 : vector<8x1xf32> to vector<8x128xf32>
    %123 = arith.subf %113, %122 : vector<8x128xf32>
    %124 = arith.mulf %123, %123 : vector<8x128xf32>
    %cst_65 = arith.constant dense<0.000000e+00> : vector<8xf32>
    %125 = vector.multi_reduction <add>, %124, %cst_65 [1] : vector<8x128xf32> to vector<8xf32>
    %126 = vector.shape_cast %125 : vector<8xf32> to vector<8x1xf32>
    %cst_66 = arith.constant 1.280000e+02 : f32
    %127 = vector.broadcast %cst_66 : f32 to vector<8x1xf32>
    %128 = arith.divf %126, %127 : vector<8x1xf32>
    %129 = vector.broadcast %121 : vector<8x1xf32> to vector<8x128xf32>
    %130 = arith.subf %113, %129 : vector<8x128xf32>
    %cst_67 = arith.constant 9.99999996E-13 : f32
    %131 = vector.broadcast %cst_67 : f32 to vector<8x1xf32>
    %132 = arith.addf %128, %131 : vector<8x1xf32>
    %133 = math.rsqrt %132 : vector<8x1xf32>
    %134 = vector.broadcast %133 : vector<8x1xf32> to vector<8x128xf32>
    %135 = arith.mulf %130, %134 : vector<8x128xf32>
    %136 = vector.broadcast %115 : vector<1x128xf32> to vector<8x128xf32>
    %137 = arith.mulf %135, %136 : vector<8x128xf32>
    %138 = vector.broadcast %117 : vector<1x128xf32> to vector<8x128xf32>
    %139 = arith.addf %137, %138 : vector<8x128xf32>
    %140 = vector.broadcast %1 : vector<8x1xf32> to vector<8x128xf32>
    %141 = arith.mulf %139, %140 : vector<8x128xf32>
    %c0_68 = arith.constant 0 : index
    %c0_69 = arith.constant 0 : index
    %142 = vector.load %arg22[%c0_68, %c0_69] : memref<8x128xf32, #tpu.memory_space<vmem>>, vector<8x128xf32>
    tpu.vector_store %arg22[%c0_68, %c0_69], %141 {strides = array<i32>} : memref<8x128xf32, #tpu.memory_space<vmem>>, vector<8x128xf32>,
    %c1_i32 = arith.constant 1 : i32
    %143 = arith.cmpi eq, %arg1, %c1_i32 : i32
    %144 = arith.extui %143 : i1 to i32
    %c0_i32_70 = arith.constant 0 : i32
    %145 = arith.cmpi ne, %144, %c0_i32_70 : i32
    scf.if %145 {
      %146 = vector.extract_strided_slice %141 {offsets = [7, 0], sizes = [1, 128], strides = [1, 1]} : vector<8x128xf32> to vector<1x128xf32>
      %c0_71 = arith.constant 0 : index
      %c0_72 = arith.constant 0 : index
      %147 = vector.load %arg19[%c0_71, %c0_72] : memref<128x128xf32, #tpu.memory_space<vmem>>, vector<128x128xf32>
      %cst_73 = arith.constant dense<0.000000e+00> : vector<1x128xf32>
      %148 = tpu.matmul %146, %147, %cst_73 {dimension_numbers = #tpu.dot_dimension_numbers<[1], [0], [0], [1], [0, 0, 1, 1], [], []>} : vector<1x128xf32>, vector<128x128xf32>, vector<1x128xf32> -> vector<1x128xf32>
      %c0_74 = arith.constant 0 : index
      %c0_75 = arith.constant 0 : index
      %149 = vector.load %arg20[%c0_74, %c0_75] : memref<1x128xf32, #tpu.memory_space<vmem>>, vector<1x128xf32>
      %150 = arith.addf %148, %149 : vector<1x128xf32>
      %c0_76 = arith.constant 0 : index
      %c0_77 = arith.constant 0 : index
      %c0_78 = arith.constant 0 : index
      %151 = vector.load %arg21[%c0_76, %c0_77, %c0_78] : memref<1x1x128xf32, #tpu.memory_space<vmem>>, vector<1x1x128xf32>
      %152 = vector.shape_cast %151 : vector<1x1x128xf32> to vector<1x128xf32>
      %153 = vector.shape_cast %150 : vector<1x128xf32> to vector<1x1x128xf32>
      tpu.vector_store %arg21[%c0_76, %c0_77, %c0_78], %153 {strides = array<i32>} : memref<1x1x128xf32, #tpu.memory_space<vmem>>, vector<1x1x128xf32>,
    } else {
    }
    return
  }
  func.func @transform_0(%arg0: i32, %arg1: i32) -> (i32, i32, i32) {
    %c0_i32 = arith.constant 0 : i32
    %c0_i32_0 = arith.constant 0 : i32
    %c0_i32_1 = arith.constant 0 : i32
    return %arg0, %c0_i32, %c0_i32_0 : i32, i32, i32
  }
  func.func @transform_1(%arg0: i32, %arg1: i32) -> (i32, i32, i32) {
    %c0_i32 = arith.constant 0 : i32
    %c0_i32_0 = arith.constant 0 : i32
    %c0_i32_1 = arith.constant 0 : i32
    return %arg0, %c0_i32, %c0_i32_0 : i32, i32, i32
  }
  func.func @transform_2(%arg0: i32, %arg1: i32) -> (i32, i32, i32) {
    %c0_i32 = arith.constant 0 : i32
    %c0_i32_0 = arith.constant 0 : i32
    %c0_i32_1 = arith.constant 0 : i32
    return %arg0, %c0_i32, %c0_i32_0 : i32, i32, i32
  }
  func.func @transform_3(%arg0: i32, %arg1: i32) -> (i32, i32) {
    %c0_i32 = arith.constant 0 : i32
    %c0_i32_0 = arith.constant 0 : i32
    %c0_i32_1 = arith.constant 0 : i32
    return %c0_i32, %c0_i32_0 : i32, i32
  }
  func.func @transform_4(%arg0: i32, %arg1: i32) -> (i32, i32) {
    %c0_i32 = arith.constant 0 : i32
    %c0_i32_0 = arith.constant 0 : i32
    %c0_i32_1 = arith.constant 0 : i32
    return %c0_i32, %c0_i32_0 : i32, i32
  }
  func.func @transform_5(%arg0: i32, %arg1: i32) -> (i32, i32, i32) {
    %c0_i32 = arith.constant 0 : i32
    %c0_i32_0 = arith.constant 0 : i32
    %c0_i32_1 = arith.constant 0 : i32
    return %arg1, %c0_i32, %c0_i32_0 : i32, i32, i32
  }
  func.func @transform_6(%arg0: i32, %arg1: i32) -> (i32, i32, i32) {
    %c0_i32 = arith.constant 0 : i32
    %c0_i32_0 = arith.constant 0 : i32
    %c0_i32_1 = arith.constant 0 : i32
    return %arg1, %c0_i32, %c0_i32_0 : i32, i32, i32
  }
  func.func @transform_7(%arg0: i32, %arg1: i32) -> (i32, i32, i32, i32) {
    %c0_i32 = arith.constant 0 : i32
    %c0_i32_0 = arith.constant 0 : i32
    %c0_i32_1 = arith.constant 0 : i32
    %c0_i32_2 = arith.constant 0 : i32
    return %arg1, %c0_i32, %c0_i32_0, %c0_i32_1 : i32, i32, i32, i32
  }
  func.func @transform_8(%arg0: i32, %arg1: i32) -> (i32, i32, i32) {
    %c0_i32 = arith.constant 0 : i32
    %c0_i32_0 = arith.constant 0 : i32
    %c0_i32_1 = arith.constant 0 : i32
    return %arg1, %c0_i32, %c0_i32_0 : i32, i32, i32
  }
  func.func @transform_9(%arg0: i32, %arg1: i32) -> (i32, i32, i32) {
    %c0_i32 = arith.constant 0 : i32
    %c0_i32_0 = arith.constant 0 : i32
    %c0_i32_1 = arith.constant 0 : i32
    return %arg1, %c0_i32, %c0_i32_0 : i32, i32, i32
  }
  func.func @transform_10(%arg0: i32, %arg1: i32) -> (i32, i32, i32) {
    %c0_i32 = arith.constant 0 : i32
    %c0_i32_0 = arith.constant 0 : i32
    %c0_i32_1 = arith.constant 0 : i32
    return %arg1, %c0_i32, %c0_i32_0 : i32, i32, i32
  }
  func.func @transform_11(%arg0: i32, %arg1: i32) -> (i32, i32, i32) {
    %c0_i32 = arith.constant 0 : i32
    %c0_i32_0 = arith.constant 0 : i32
    %c0_i32_1 = arith.constant 0 : i32
    return %arg1, %c0_i32, %c0_i32_0 : i32, i32, i32
  }
  func.func @transform_12(%arg0: i32, %arg1: i32) -> (i32, i32, i32) {
    %c0_i32 = arith.constant 0 : i32
    %c0_i32_0 = arith.constant 0 : i32
    %c0_i32_1 = arith.constant 0 : i32
    return %arg1, %c0_i32, %c0_i32_0 : i32, i32, i32
  }
  func.func @transform_13(%arg0: i32, %arg1: i32) -> (i32, i32, i32) {
    %c0_i32 = arith.constant 0 : i32
    %c0_i32_0 = arith.constant 0 : i32
    %c0_i32_1 = arith.constant 0 : i32
    return %arg1, %c0_i32, %c0_i32_0 : i32, i32, i32
  }
  func.func @transform_14(%arg0: i32, %arg1: i32) -> (i32, i32, i32) {
    %c0_i32 = arith.constant 0 : i32
    %c0_i32_0 = arith.constant 0 : i32
    %c0_i32_1 = arith.constant 0 : i32
    return %arg1, %c0_i32, %c0_i32_0 : i32, i32, i32
  }
  func.func @transform_15(%arg0: i32, %arg1: i32) -> (i32, i32, i32) {
    %c0_i32 = arith.constant 0 : i32
    %c0_i32_0 = arith.constant 0 : i32
    %c0_i32_1 = arith.constant 0 : i32
    return %arg1, %c0_i32, %c0_i32_0 : i32, i32, i32
  }
  func.func @transform_16(%arg0: i32, %arg1: i32) -> (i32, i32, i32) {
    %c0_i32 = arith.constant 0 : i32
    %c0_i32_0 = arith.constant 0 : i32
    %c0_i32_1 = arith.constant 0 : i32
    return %arg1, %c0_i32, %c0_i32_0 : i32, i32, i32
  }
  func.func @transform_17(%arg0: i32, %arg1: i32) -> (i32, i32) {
    %c0_i32 = arith.constant 0 : i32
    %c0_i32_0 = arith.constant 0 : i32
    %c0_i32_1 = arith.constant 0 : i32
    return %c0_i32, %c0_i32_0 : i32, i32
  }
  func.func @transform_18(%arg0: i32, %arg1: i32) -> (i32, i32) {
    %c0_i32 = arith.constant 0 : i32
    %c0_i32_0 = arith.constant 0 : i32
    %c0_i32_1 = arith.constant 0 : i32
    return %c0_i32, %c0_i32_0 : i32, i32
  }
  func.func @transform_19(%arg0: i32, %arg1: i32) -> (i32, i32, i32) {
    %c0_i32 = arith.constant 0 : i32
    %c0_i32_0 = arith.constant 0 : i32
    %c0_i32_1 = arith.constant 0 : i32
    return %arg0, %c0_i32, %c0_i32_0 : i32, i32, i32
  }
}

</mosaic_0001>

<bundles_post_ra>
// kernel: xlm_forward.1
= control target key start
LH: loop header
LB: loop body
LE: loop exit
PB: predicated region body
PF: predicated region fallthrough
CT: control target
= control target key end

     0   :  { %s4779_s0 = inlined_call_operand.vmem [shape: f32[2,8,128], index: 0, kind: input, shape index: {}]   ;;  %s4780_s1 = inlined_call_operand.vmem [shape: f32[2,1,8], index: 1, kind: input, shape index: {}]   ;;  %s4781_s2 = inlined_call_operand.vmem [shape: f32[2,8,1], index: 2, kind: input, shape index: {}]   ;;  %s4782_s3 = inlined_call_operand.vmem [shape: f32[1,128], index: 3, kind: input, shape index: {}]   ;;  %s4783_s4 = inlined_call_operand.hbm [shape: f32[1,128], index: 4, kind: input, shape index: {}]   ;;  %s4784_s5 = inlined_call_operand.hbm [shape: bf16[2,128,384], index: 5, kind: input, shape index: {}]   ;;  %s4785_s6 = inlined_call_operand.vmem [shape: f32[2,1,384], index: 6, kind: input, shape index: {}]   ;;  %s4786_s7 = inlined_call_operand.vmem [shape: bf16[2,2,64,128], index: 7, kind: input, shape index: {}]   ;;  %s4787_s8 = inlined_call_operand.vmem [shape: f32[2,1,128], index: 8, kind: input, shape index: {}]   ;;  %s4788_s9 = inlined_call_operand.vmem [shape: f32[2,1,128], index: 9, kind: input, shape index: {}]   ;;  %s4789_s10 = inlined_call_operand.vmem [shape: f32[2,1,128], index: 10, kind: input, shape index: {}]   ;;  %s4790_s11 = inlined_call_operand.hbm [shape: bf16[2,128,512], index: 11, kind: input, shape index: {}]   ;;  %s4791_s12 = inlined_call_operand.vmem [shape: f32[2,1,512], index: 12, kind: input, shape index: {}]   ;;  %s4792_s13 = inlined_call_operand.hbm [shape: bf16[2,512,128], index: 13, kind: input, shape index: {}]   ;;  %s4793_s14 = inlined_call_operand.vmem [shape: f32[2,1,128], index: 14, kind: input, shape index: {}]   ;;  %s4794_s15 = inlined_call_operand.hbm [shape: f32[2,1,128], index: 15, kind: input, shape index: {}]   ;;  %s4795_s16 = inlined_call_operand.hbm [shape: f32[2,1,128], index: 16, kind: input, shape index: {}]   ;;  %s4796_s17 = inlined_call_operand.vmem [shape: f32[128,128], index: 17, kind: input, shape index: {}]   ;;  %s4797_s18 = inlined_call_operand.hbm [shape: f32[1,128], index: 18, kind: input, shape index: {}]   ;;  %s4798_s19 = inlined_call_operand.hbm [shape: f32[2,1,128], index: 19, kind: output, shape index: {}]  }
   0x1   :  { %4832 = sst [smem:[#allocation39_spill]] %s4779_s0 }
   0x2   :  { %4833 = sst [smem:[#allocation40_spill]] %s4780_s1 }
   0x3   :  { %4834 = sst [smem:[#allocation41_spill]] %s4781_s2 }
   0x4   :  { %4835 = sst [smem:[#allocation42_spill]] %s4782_s3 }
   0x5   :  { %4836 = sst [smem:[#allocation43_spill]] %s4783_s4 }
   0x6   :  { %4837 = sst [smem:[#allocation44_spill]] %s4784_s5 }
   0x7   :  { %4838 = sst [smem:[#allocation45_spill]] %s4785_s6 }
   0x8   :  { %4839 = sst [smem:[#allocation46_spill]] %s4786_s7 }
   0x9   :  { %4840 = sst [smem:[#allocation47_spill]] %s4787_s8 }
   0xa   :  { %4841 = sst [smem:[#allocation48_spill]] %s4788_s9 }
   0xb   :  { %4842 = sst [smem:[#allocation49_spill]] %s4789_s10 }
   0xc   :  { %4843 = sst [smem:[#allocation50_spill]] %s4790_s11 }
   0xd   :  { %4844 = sst [smem:[#allocation51_spill]] %s4791_s12 }
   0xe   :  { %4845 = sst [smem:[#allocation52_spill]] %s4792_s13 }
   0xf   :  { %4846 = sst [smem:[#allocation53_spill]] %s4793_s14 }
  0x10   :  { %4847 = sst [smem:[#allocation54_spill]] %s4794_s15 }
  0x11   :  { %4848 = sst [smem:[#allocation55_spill]] %s4795_s16 }
  0x12   :  { %4849 = sst [smem:[#allocation56_spill]] %s4796_s17 }
  0x13   :  { %4850 = sst [smem:[#allocation57_spill]] %s4797_s18 }
  0x14   :  { %4851 = sst [smem:[#allocation58_spill]] %s4798_s19 }
  0x15   :  { %24 = vsyncpa [#allocation4], 0 }
  0x16   :  { %25 = vsyncpa [#allocation7], 0 }
  0x17   :  { %27 = vsyncpa [#allocation7 + $0x1], 0 }
  0x18   :  { %28 = vsyncpa [#allocation10], 0 }
  0x19   :  { %30 = vsyncpa [#allocation10 + $0x1], 0 }
  0x1a   :  { %31 = vsyncpa [#allocation13], 0 }
  0x1b   :  { %33 = vsyncpa [#allocation13 + $0x1], 0 }
  0x1c   :  { %34 = vsyncpa [#allocation5], 0 }
  0x1d   :  { %36 = vsyncpa [#allocation5 + $0x1], 0  ;;  %s4026_s0 = smov 0   ;;  %s4028_s30 = smov 0  }
  0x1e   :  { %s4030_s20 = smov 0   ;;  %s4032_s21 = smov 0  }
  0x1f   :  { %s4034_s1 = smov 0   ;;  %s4036_s22 = smov 0  }
  0x20   :  { %s4038_s2 = smov 0   ;;  %s4040_s23 = smov 0  }
  0x21   :  { %s4042_s24 = smov 0   ;;  %s4044_s25 = smov 0  }
  0x22   :  { %s4046_s3 = smov 0  }
  0x23 LB: > { %4852 = sst [smem:[#allocation22_spill]] %s3862_s0  ;;  %s4080_s26 = sadd.s32 4294967295, %s3902_s3   ;;  %s3902_s3 = sphi %s4046_s3, %s42_s3   ;;  %s3898_s25 = sphi %s4044_s25, %s4946_s25   ;;  %s3894_s24 = sphi %s4042_s24, %s4945_s24   ;;  %s3890_s23 = sphi %s4040_s23, %s4944_s23   ;;  %s3886_s2 = sphi %s4038_s2, %s4943_s2   ;;  %s3882_s22 = sphi %s4036_s22, %s4942_s22   ;;  %s3878_s1 = sphi %s4034_s1, %s4941_s1   ;;  %s3874_s21 = sphi %s4032_s21, %s4940_s21   ;;  %s3870_s20 = sphi %s4030_s20, %s4939_s20   ;;  %s3866_s30 = sphi %s4028_s30, %s4938_s30   ;;  %s3862_s0 = sphi %s4026_s0, %s4937_s0  }
  0x24   : > { %4853 = sst [smem:[#allocation23_spill]] %s3866_s30  ;;  %s2896_s27 = sadd.s32 4294967294, %s3902_s3  }
  0x25   : > { %4854 = sst [smem:[#allocation24_spill]] %s3870_s20  ;;  %p188_p0 = scmp.ne.s32.totalorder %s3882_s22, %s3878_s1 }
  0x26   : > { %4855 = sst [smem:[#allocation25_spill]] %s3878_s1  ;;  %p189_p1 = scmp.eq.s32.totalorder %s3902_s3, 0 }
  0x27   : > { %4856 = sst [smem:[#allocation26_spill]] %s3882_s22  ;;  %p194_p2 = scmp.ne.s32.totalorder %s3878_s1, %s3874_s21 }
  0x28   : > { %4857 = sst [smem:[#allocation27_spill]] %s3886_s2  ;;  %p4805_p3 = scmp.eq.s32.totalorder %s4080_s26, 0 }
  0x29   : > { %4858 = sst [smem:[#allocation28_spill]] %s3890_s23  ;;  %p4090_p4 = por %p189_p1, %p188_p0 }
  0x2a   : > { %4859 = sst [smem:[#allocation29_spill]] %s3894_s24  ;;  %p545_p5 = scmp.ne.s32.totalorder %s3870_s20, %s3866_s30 }
  0x2b   : > { %4860 = sst [smem:[#allocation30_spill]] %s3898_s25  ;;  %p4098_p6 = por %p4805_p3, %p194_p2 }
  0x2c   : > { %4861 = sst [smem:[#allocation31_spill]] %s3902_s3  ;;  %p546_p7 = scmp.eq.s32.totalorder %s4080_s26, 3 }
  0x2d   : > { %s4863_s17 = scalar_select %p4098_p6, 1, 0 }
  0x2e   : > { %p551_p8 = scmp.ne.s32.totalorder %s3866_s30, %s3862_s0  ;;  %p552_p9 = scmp.eq.s32.totalorder %s2896_s27, 3 }
  0x2f   : > { %p4105_p10 = por %p546_p7, %p545_p5  ;;  %p2897_p11 = scmp.ge.s32.totalorder %s3902_s3, 1 }
  0x30   : > { %p4110_p12 = por %p552_p9, %p551_p8  ;;  %p559_p13 = scmp.lt.s32.totalorder %s3902_s3, 5 }
  0x31   : > { %s4864_s21 = scalar_select %p4105_p10, 1, 0 }
  0x32   : > { %s4866_s29 = scalar_select %p4110_p12, 1, 0 }
  0x33   : > { %4865 = sst [smem:[#allocation32_spill]] %s4864_s21  ;;  %p4115_p0 = pnand %p2897_p11, %p559_p13 }
  0x34   : > { %4867 = sst [smem:[#allocation33_spill]] %s4866_s29  ;;  %s3904_s14 = smov [#allocation14]  }
  0x35   : > { %s4868_s28 = scalar_select %p4115_p0, 1, 0 }
  0x36   : > { %s589_s12 = sshll.u32 %s3904_s14, 4  ;;  %p3276_p1 = pneg %p4115_p0  ;;  %s590_s12 = int_to_ptr.vmem [resolvable:$true] %s589_s12 }
  0x37   : > { %p3305_p2 = scmp.lt.s32.totalorder %s3902_s3, 4  ;;  %s4871_s18 = sld [smem:[#allocation57_spill]] }
  0x38   : > { %p4124_p5 = pnand %p3276_p1, %p4805_p3 }
  0x39   : > { %p4130_p7 = pnand %p3305_p2, %p4090_p4 }
  0x3a   : > { %s4869_s27 = scalar_select %p4124_p5, 1, 0 }
  0x3b   : > { %s4870_s29 = scalar_select %p4130_p7, 1, 0 }
  0x3c   : > { %p4818_p9 = pneg %p4124_p5 }
  0x3d   : > { %s3558_s14 = scalar_lea.hbm %s4871_s18, 16 }
  0x3e   : > { %p3559_p8 = scmp.ne.s32.totalorder %s4871_s18, %s3558_s14  ;;  %p3565_p4 = scmp.lt.u32.totalorder %s3558_s14, %s4871_s18 }
  0x40   : > { %p3561_p11 = pnand %p4818_p9, %p3559_p8 }
  0x42   : > { %p3562_p13 = pneg %p3561_p11 }
  0x44   : > { %p3567_p1 = pnand %p3565_p4, %p3562_p13 }
  0x46   : > { %3570 = shalt.err (!%p3567_p1)
}
  0x47   : > { %s3571_s8 = scalar_lea.vmem %s590_s12, 16  ;;  %s3578_s9 = scalar_lea.vmem %s590_s12, 32 }
  0x48   : > { %p3572_p2 = scmp.ne.s32.totalorder %s590_s12, %s3571_s8  ;;  %p3579_p10 = scmp.lt.s32.totalorder %s590_s12, %s590_s12 }
  0x49   : > { %p3580_p6 = scmp.lt.s32.totalorder %s3578_s9, %s3571_s8 }
  0x4a   : > { %p3574_p3 = pnand %p3572_p2, %p4818_p9 }
  0x4b   : > { %p3581_p0 = por %p3580_p6, %p3579_p10 }
  0x4c   : > { %p3575_p12 = pneg %p3574_p3 }
  0x4e   : > { %p3582_p7 = pnand %p3581_p0, %p3575_p12 }
  0x50   : > { %3585 = shalt.err (!%p3582_p7)
}
  0x51   : > { %3282 = dma.hbm_to_vmem [thread:$0]  (!%p4124_p5), %s4871_s18, 16, %s590_s12, [#allocation13]  }
  0x52   : > { %s51_s8 = sadd.s32 1, %s3894_s24  ;;  %s54_s0 = sadd.s32 1, %s3898_s25 }
  0x53   : > { %p52_p3 = scmp.ge.s32.totalorder %s51_s8, 2  ;;  %s4159_s21 = sand.u32 1, %s3902_s3  }
  0x54   : > { %s4162_s14 = sand.u32 1, %s3882_s22   ;;  %s3253_s12 = smul.u32 3072, %s3894_s24 }
  0x55   : > { %s4948_s8 = smov (%p52_p3, %s51_s8), 0  ;;  %s4950_s0 = smov (!%p52_p3, %s54_s0), %s3898_s25 }
  0x56   : > { %4872 = sst [smem:[#allocation34_spill]] %s4948_s8  ;;  %s178_s19 = ssub.s32 %s3894_s24, %s4948_s8 }
  0x57   : > { %s3252_s9 = smul.u32 192, %s4162_s14  ;;  %p56_p6 = scmp.ge.s32.totalorder %s4950_s0, 2 }
  0x58   : > { %p179_p10 = scmp.eq.s32.totalorder %s178_s19, 0  ;;  %s4874_s10 = sadd.s32 1, %s3882_s22 }
  0x59   : > { %s4952_s0 = smov (%p56_p6, %s4950_s0), 0  ;;  %s4876_s5 = sld [smem:[#allocation44_spill]] }
  0x5a   : > { %4873 = sst [smem:[#allocation35_spill]] %s4952_s0  ;;  %s532_s18 = ssub.s32 %s3898_s25, %s4952_s0 }
  0x5b   : > { %s4176_s6 = scalar_select %p179_p10, %s3882_s22, %s4874_s10  }
  0x5c   : > { %p533_p12 = scmp.eq.s32.totalorder %s532_s18, 0  ;;  %s624_s8 = scalar_lea.vmem [#allocation6], %s3252_s9 }
  0x5d   : > { %4875 = sst [smem:[#allocation36_spill]] %s4176_s6  ;;  %s631_s19 = sshll.u32 %s624_s8, 4  ;;  %s4185_s19 = int_to_ptr.vmem [resolvable:$true] %s631_s19 }
  0x5e   : > { %s4877_s30 = sadd.s32 1, %s3870_s20  ;;  %s2902_s10 = sshll.u32 %s4162_s14, 8 }
  0x5f   : > { %s4183_s2 = scalar_lea.hbm %s4876_s5, %s3253_s12  ;;  %s4823_s6 = scalar_lea.sflag [#allocation7], %s4159_s21 }
  0x60   : > { %s4190_s23 = scalar_select %p533_p12, %s3870_s20, %s4877_s30  }
  0x61   : > { %s3586_s0 = scalar_lea.hbm %s4183_s2, 3072  ;;  %p4879_p7 = scmp.ne.s32.totalorder %s4870_s29, 0 }
  0x62   : > { %4878 = sst [smem:[#allocation37_spill]] %s4190_s23  ;;  %p3587_p0 = scmp.ne.s32.totalorder %s4183_s2, %s3586_s0 }
  0x63   : > { %p4198_p8 = pneg %p4879_p7  ;;  %s3591_s8 = scalar_lea.hbm %s4876_s5, 6144 }
  0x64   : > { %p3592_p4 = scmp.lt.u32.totalorder %s4183_s2, %s4876_s5  ;;  %p3593_p1 = scmp.lt.u32.totalorder %s3591_s8, %s3586_s0 }
  0x65   : > { %s4880_s7 = scalar_select %p4198_p8, 1, 0 }
  0x66   : > { %p3589_p11 = pnand %p4198_p8, %p3587_p0  ;;  %p3594_p2 = por %p3593_p1, %p3592_p4 }
  0x67   : > { %p3595_p3 = scmp.lt.u32.totalorder %s3586_s0, %s4183_s2 }
  0x68   : > { %p3590_p13 = pneg %p3589_p11 }
  0x69   : > { %p3596_p6 = por %p3595_p3, %p3594_p2 }
  0x6b   : > { %p3597_p10 = pnand %p3596_p6, %p3590_p13 }
  0x6d   : > { %3600 = shalt.err (!%p3597_p10)
}
  0x6e   : > { %s3601_s12 = scalar_lea.vmem %s4185_s19, 3072  ;;  %s3905_s18 = smov [#allocation6]  }
  0x6f   : > { %p3602_p12 = scmp.ne.s32.totalorder %s4185_s19, %s3601_s12  ;;  %s3606_s3 = sshll.u32 %s3905_s18, 4  ;;  %s3607_s3 = int_to_ptr.vmem [resolvable:$false] %s3606_s3 }
  0x70   : > { %s3608_s9 = scalar_lea.vmem %s3607_s3, 6144  ;;  %p3609_p9 = scmp.lt.s32.totalorder %s4185_s19, %s3607_s3 }
  0x71   : > { %p3604_p0 = pnand %p3602_p12, %p4198_p8  ;;  %p3610_p5 = scmp.lt.s32.totalorder %s3608_s9, %s3601_s12 }
  0x73   : > { %p3605_p11 = pneg %p3604_p0  ;;  %p3611_p4 = por %p3610_p5, %p3609_p9 }
  0x75   : > { %p3612_p1 = pnand %p3611_p4, %p3605_p11 }
  0x77   : > { %3615 = shalt.err (!%p3612_p1)
}
  0x78   : > { %s3906_s0 = smov 192   ;;  %s3907_s8 = smov 12  }
  0x79   : > { %3286 = dma.hbm_to_vmem [thread:$0]  (!%p4879_p7), %s4183_s2, 3072, %s4185_s19, %s4823_s6, %s3906_s0, %s3906_s0, %s3907_s8  }
  0x7a   : > { %s3038_s30 = sshll.u32 %s3894_s24, 12  ;;  %s4881_s11 = sld [smem:[#allocation50_spill]] }
  0x7b   : > { %s678_s9 = scalar_lea.vmem [#allocation8], %s2902_s10  ;;  %s4882_s13 = sld [smem:[#allocation52_spill]] }
  0x7c   : > { %s685_s5 = sshll.u32 %s678_s9, 4  ;;  %s706_s2 = scalar_lea.vmem [#allocation9], %s2902_s10  ;;  %s4231_s5 = int_to_ptr.vmem [resolvable:$true] %s685_s5 }
  0x7d   : > { %s713_s19 = sshll.u32 %s706_s2, 4  ;;  %s703_s0 = scalar_lea.sflag [#allocation10], %s4159_s21  ;;  %s4240_s19 = int_to_ptr.vmem [resolvable:$true] %s713_s19 }
  0x80   : > { %s4227_s3 = scalar_lea.hbm %s4881_s11, %s3038_s30 }
  0x81   : > { %s4236_s23 = scalar_lea.hbm %s4882_s13, %s3038_s30  ;;  %s3621_s22 = scalar_lea.hbm %s4882_s13, 8192 }
  0x82   : > { %s3616_s8 = scalar_lea.hbm %s4236_s23, 4096  ;;  %p3622_p2 = scmp.lt.u32.totalorder %s4236_s23, %s4882_s13 }
  0x83   : > { %p3617_p5 = scmp.ne.s32.totalorder %s4236_s23, %s3616_s8  ;;  %p3623_p3 = scmp.lt.u32.totalorder %s3621_s22, %s3616_s8 }
  0x84   : > { %p3625_p10 = scmp.lt.u32.totalorder %s3616_s8, %s4236_s23 }
  0x85   : > { %p3619_p9 = pnand %p3617_p5, %p4198_p8  ;;  %p3624_p6 = por %p3623_p3, %p3622_p2 }
  0x87   : > { %p3620_p13 = pneg %p3619_p9  ;;  %p3626_p12 = por %p3625_p10, %p3624_p6 }
  0x89   : > { %p3627_p0 = pnand %p3626_p12, %p3620_p13 }
  0x8b   : > { %3630 = shalt.err (!%p3627_p0)
}
  0x8c   : > { %s3631_s10 = scalar_lea.vmem %s4240_s19, 4096  ;;  %s3908_s9 = smov [#allocation9]  }
  0x8d   : > { %p3632_p11 = scmp.ne.s32.totalorder %s4240_s19, %s3631_s10  ;;  %s3636_s2 = sshll.u32 %s3908_s9, 4  ;;  %s3637_s2 = int_to_ptr.vmem [resolvable:$false] %s3636_s2 }
  0x8e   : > { %s3638_s18 = scalar_lea.vmem %s3637_s2, 8192  ;;  %p3639_p5 = scmp.lt.s32.totalorder %s4240_s19, %s3637_s2 }
  0x8f   : > { %p3634_p4 = pnand %p3632_p11, %p4198_p8  ;;  %p3640_p9 = scmp.lt.s32.totalorder %s3638_s18, %s3631_s10 }
  0x91   : > { %p3635_p1 = pneg %p3634_p4  ;;  %p3641_p2 = por %p3640_p9, %p3639_p5 }
  0x93   : > { %p3642_p3 = pnand %p3641_p2, %p3635_p1 }
  0x95   : > { %3645 = shalt.err (!%p3642_p3)
}
  0x96   : > { %s3909_s8 = smov 64   ;;  %s3910_s12 = smov 4  }
  0x97   : > { %3292 = dma.hbm_to_vmem [thread:$0]  (!%p4879_p7), %s4236_s23, 4096, %s4240_s19, %s703_s0, %s3909_s8, %s3909_s8, %s3910_s12  }
  0x98   : > { %s3911_s22 = smov [#allocation3]   ;;  %s4883_s4 = sld [smem:[#allocation43_spill]] }
  0x99   : > { %s575_s25 = sshll.u32 %s3911_s22, 4  ;;  %p4884_p6 = scmp.ne.s32.totalorder %s4869_s27, 0  ;;  %s576_s25 = int_to_ptr.vmem [resolvable:$true] %s575_s25 }
  0x9b   : > { %p4885_p10 = pneg %p4884_p6 }
  0x9e   : > { %s3646_s10 = scalar_lea.hbm %s4883_s4, 16 }
  0x9f   : > { %p3647_p13 = scmp.ne.s32.totalorder %s4883_s4, %s3646_s10  ;;  %p3653_p11 = scmp.lt.u32.totalorder %s3646_s10, %s4883_s4 }
  0xa1   : > { %p3649_p12 = pnand %p3647_p13, %p4885_p10 }
  0xa3   : > { %p3650_p0 = pneg %p3649_p12 }
  0xa5   : > { %p3655_p4 = pnand %p3653_p11, %p3650_p0 }
  0xa7   : > { %3658 = shalt.err (!%p3655_p4)
}
  0xa8   : > { %s3659_s23 = scalar_lea.vmem %s576_s25, 16  ;;  %p4886_p5 = pmov %p4885_p10 }
  0xa9   : > { %p3660_p1 = scmp.ne.s32.totalorder %s576_s25, %s3659_s23  ;;  %s3666_s19 = scalar_lea.vmem %s576_s25, 32 }
  0xaa   : > { %p3667_p3 = scmp.lt.s32.totalorder %s576_s25, %s576_s25  ;;  %p3668_p7 = scmp.lt.s32.totalorder %s3666_s19, %s3659_s23 }
  0xab   : > { %p3662_p9 = pnand %p3660_p1, %p4886_p5 }
  0xac   : > { %p3669_p8 = por %p3668_p7, %p3667_p3 }
  0xad   : > { %p3663_p2 = pneg %p3662_p9 }
  0xaf   : > { %p3670_p10 = pnand %p3669_p8, %p3663_p2 }
  0xb1   : > { %3673 = shalt.err (!%p3670_p10)
}
  0xb2   : > { %3279 = dma.hbm_to_vmem [thread:$0]  (!%p4884_p6), %s4883_s4, 16, %s576_s25, [#allocation4]  }
  0xb3   : > { %s3674_s6 = scalar_lea.hbm %s4227_s3, 4096  ;;  %p4887_p12 = scmp.ne.s32.totalorder %s4880_s7, 0 }
  0xb4   : > { %p3675_p13 = scmp.ne.s32.totalorder %s4227_s3, %s3674_s6  ;;  %s3679_s30 = scalar_lea.hbm %s4881_s11, 8192 }
  0xb5   : > { %p3680_p7 = scmp.lt.u32.totalorder %s4227_s3, %s4881_s11  ;;  %p3681_p8 = scmp.lt.u32.totalorder %s3679_s30, %s3674_s6 }
  0xb6   : > { %p3677_p0 = pnand %p3675_p13, %p4887_p12  ;;  %p3683_p1 = scmp.lt.u32.totalorder %s3674_s6, %s4227_s3 }
  0xb7   : > { %p3682_p4 = por %p3681_p8, %p3680_p7 }
  0xb8   : > { %p3678_p11 = pneg %p3677_p0 }
  0xb9   : > { %p3684_p5 = por %p3683_p1, %p3682_p4 }
  0xbb   : > { %p3685_p9 = pnand %p3684_p5, %p3678_p11 }
  0xbd   : > { %3688 = shalt.err (!%p3685_p9)
}
  0xbe   : > { %s3689_s25 = scalar_lea.vmem %s4231_s5, 4096  ;;  %s3912_s10 = smov [#allocation8]  }
  0xbf   : > { %p3690_p6 = scmp.ne.s32.totalorder %s4231_s5, %s3689_s25  ;;  %s3694_s2 = sshll.u32 %s3912_s10, 4  ;;  %s3695_s2 = int_to_ptr.vmem [resolvable:$false] %s3694_s2 }
  0xc0   : > { %s3696_s18 = scalar_lea.vmem %s3695_s2, 8192  ;;  %p3697_p10 = scmp.lt.s32.totalorder %s4231_s5, %s3695_s2 }
  0xc1   : > { %p3692_p2 = pnand %p3690_p6, %p4887_p12  ;;  %p3698_p13 = scmp.lt.s32.totalorder %s3696_s18, %s3689_s25 }
  0xc3   : > { %p3693_p3 = pneg %p3692_p2  ;;  %p3699_p0 = por %p3698_p13, %p3697_p10 }
  0xc5   : > { %p3700_p7 = pnand %p3699_p0, %p3693_p3 }
  0xc7   : > { %3703 = shalt.err (!%p3700_p7)
}
  0xc8   : > { %s3913_s23 = smov 256   ;;  %s3914_s19 = smov 16  }
  0xc9   : > { %p4888_p11 = scmp.ne.s32.totalorder %s4870_s29, 0  ;;  %s4889_s8 = scalar_lea.sflag [#allocation7], %s4159_s21 }
  0xca   : > { %s2908_s13 = sshll.u32 %s3894_s24, 4  ;;  %s732_s6 = scalar_lea.vmem [#allocation11], %s4162_s14 }
  0xcb   : > { %3289 = dma.hbm_to_vmem [thread:$0]  (!%p4888_p11), %s4227_s3, 4096, %s4231_s5, %s4889_s8, %s3913_s23, %s3913_s23, %s3914_s19  }
  0xcc   : > { %s739_s12 = sshll.u32 %s732_s6, 4  ;;  %s4890_s15 = sld [smem:[#allocation54_spill]]  ;;  %s740_s12 = int_to_ptr.vmem [resolvable:$true] %s739_s12 }
  0xd2   : > { %s737_s9 = scalar_lea.hbm %s4890_s15, %s2908_s13  ;;  %s3709_s2 = scalar_lea.hbm %s4890_s15, 32 }
  0xd3   : > { %s3704_s27 = scalar_lea.hbm %s737_s9, 16  ;;  %p3710_p5 = scmp.lt.u32.totalorder %s737_s9, %s4890_s15 }
  0xd4   : > { %p3705_p8 = scmp.ne.s32.totalorder %s737_s9, %s3704_s27  ;;  %p3711_p9 = scmp.lt.u32.totalorder %s3709_s2, %s3704_s27 }
  0xd5   : > { %p3713_p2 = scmp.lt.u32.totalorder %s3704_s27, %s737_s9 }
  0xd6   : > { %p3707_p4 = pnand %p3705_p8, %p4887_p12  ;;  %p3712_p6 = por %p3711_p9, %p3710_p5 }
  0xd8   : > { %p3708_p1 = pneg %p3707_p4  ;;  %p3714_p3 = por %p3713_p2, %p3712_p6 }
  0xda   : > { %p3715_p10 = pnand %p3714_p3, %p3708_p1 }
  0xdc   : > { %3718 = shalt.err (!%p3715_p10)
}
  0xdd   : > { %s3719_s3 = scalar_lea.vmem %s740_s12, 16  ;;  %s3915_s23 = smov [#allocation11]  }
  0xde   : > { %p3720_p13 = scmp.ne.s32.totalorder %s740_s12, %s3719_s3  ;;  %s3724_s19 = sshll.u32 %s3915_s23, 4  ;;  %s3725_s19 = int_to_ptr.vmem [resolvable:$false] %s3724_s19 }
  0xdf   : > { %s3726_s8 = scalar_lea.vmem %s3725_s19, 32  ;;  %p3727_p8 = scmp.lt.s32.totalorder %s740_s12, %s3725_s19 }
  0xe0   : > { %p3722_p0 = pnand %p3720_p13, %p4887_p12  ;;  %p3728_p4 = scmp.lt.s32.totalorder %s3726_s8, %s3719_s3 }
  0xe2   : > { %p3723_p7 = pneg %p3722_p0  ;;  %p3729_p11 = por %p3728_p4, %p3727_p8 }
  0xe4   : > { %p3730_p5 = pnand %p3729_p11, %p3723_p7 }
  0xe6   : > { %3733 = shalt.err (!%p3730_p5)
}
  0xe7   : > { %p4891_p9 = scmp.ne.s32.totalorder %s4870_s29, 0  ;;  %s4892_s16 = sld [smem:[#allocation55_spill]] }
  0xe8   : > { %s749_s27 = scalar_lea.vmem [#allocation12], %s4162_s14  ;;  %s747_s10 = scalar_lea.sflag [#allocation13], %s4159_s21 }
  0xe9   : > { %3295 = dma.hbm_to_vmem [thread:$0]  (!%p4891_p9), %s737_s9, 16, %s740_s12, %s703_s0  }
  0xea   : > { %s756_s25 = sshll.u32 %s749_s27, 4  ;;  %s757_s25 = int_to_ptr.vmem [resolvable:$true] %s756_s25 }
  0xed   : > { %s4335_s30 = scalar_lea.hbm %s4892_s16, %s2908_s13  ;;  %s3739_s9 = scalar_lea.hbm %s4892_s16, 32 }
  0xee   : > { %s3734_s2 = scalar_lea.hbm %s4335_s30, 16  ;;  %p3740_p2 = scmp.lt.u32.totalorder %s4335_s30, %s4892_s16 }
  0xef   : > { %p3735_p11 = scmp.ne.s32.totalorder %s4335_s30, %s3734_s2  ;;  %p3741_p3 = scmp.lt.u32.totalorder %s3739_s9, %s3734_s2 }
  0xf0   : > { %p3743_p13 = scmp.lt.u32.totalorder %s3734_s2, %s4335_s30 }
  0xf1   : > { %p3737_p1 = pnand %p3735_p11, %p4887_p12  ;;  %p3742_p10 = por %p3741_p3, %p3740_p2 }
  0xf3   : > { %p3738_p6 = pneg %p3737_p1  ;;  %p3744_p0 = por %p3743_p13, %p3742_p10 }
  0xf5   : > { %p3745_p7 = pnand %p3744_p0, %p3738_p6 }
  0xf7   : > { %3748 = shalt.err (!%p3745_p7)
}
  0xf8   : > { %s3749_s21 = scalar_lea.vmem %s757_s25, 16  ;;  %s3916_s14 = smov [#allocation12]  }
  0xf9   : > { %p3750_p8 = scmp.ne.s32.totalorder %s757_s25, %s3749_s21  ;;  %s3754_s5 = sshll.u32 %s3916_s14, 4  ;;  %s3755_s5 = int_to_ptr.vmem [resolvable:$false] %s3754_s5 }
  0xfa   : > { %s3756_s3 = scalar_lea.vmem %s3755_s5, 32  ;;  %p3757_p11 = scmp.lt.s32.totalorder %s757_s25, %s3755_s5 }
  0xfb   : > { %p3752_p4 = pnand %p3750_p8, %p4887_p12  ;;  %p3758_p1 = scmp.lt.s32.totalorder %s3756_s3, %s3749_s21 }
  0xfd   : > { %p3753_p5 = pneg %p3752_p4  ;;  %p3759_p9 = por %p3758_p1, %p3757_p11 }
  0xff   : > { %p3760_p2 = pnand %p3759_p9, %p3753_p5 }
 0x101   : > { %3763 = shalt.err (!%p3760_p2)
}
 0x102   : > { %p4893_p3 = scmp.ne.s32.totalorder %s4870_s29, 0  ;;  %p4894_p6 = scmp.ne.s32.totalorder %s4868_s28, 0 }
 0x104   : > { %3298 = dma.hbm_to_vmem [thread:$0]  (!%p4893_p3), %s4335_s30, 16, %s757_s25, %s747_s10  }
 0x105   : > { %765 = sbr.rel (%p4894_p6) target bundleno = 3281 (0xcd1), region = 96 }
 0x10c   : > { %p4895_p10 = scmp.eq.s32.totalorder %s4080_s26, 0 }
 0x10e   : > { %3837 = dma.done.wait (%p4895_p10), [#allocation4], 16   ;;  %p4896_p12 = pmov %p4895_p10 }
 0x10f   : > { %s771_s7 = sand.u32 1, %s4080_s26   ;;  %s4364_s23 = sand.u32 1, %s3878_s1  }
 0x110   : > { %3839 = vsyncadd (%p4896_p12), [#allocation4], 4294967280  ;;  %4897 = sst [smem:[#allocation38_spill]] %s4364_s23  ;;  %s3254_s19 = smul.u32 192, %s4364_s23 }
 0x111   : > { %s772_s29 = scalar_lea.sflag [#allocation7], %s771_s7  ;;  %p4898_p9 = scmp.ne.s32.totalorder %s4863_s17, 0 }
 0x112   : > { %s4367_s8 = scalar_lea.vmem [#allocation6], %s3254_s19 }
 0x113   : > { %3841 = dma.done.wait (%p4898_p9), %s772_s29, 7168  }
 0x114   : > { %3843 = vsyncadd (%p4898_p9), %s772_s29, 4294960128  ;;  %s2912_s28 = sshll.u32 %s4364_s23, 8  ;;  %s790_s22 = scalar_lea.sflag [#allocation10], %s771_s7 }
 0x115   : > { %s4374_s6 = scalar_lea.vmem [#allocation8], %s2912_s28  ;;  %s4376_s30 = scalar_lea.vmem [#allocation9], %s2912_s28 }
 0x116   : > { %3845 = dma.done.wait (%p4898_p9), %s790_s22, 4112  }
 0x117   : > { %3847 = vsyncadd (%p4898_p9), %s790_s22, 4294963184  ;;  %s807_s25 = scalar_lea.sflag [#allocation13], %s771_s7 }
 0x118   : > { %3849 = dma.done.wait (%p4898_p9), %s807_s25, 16  }
 0x119   : > { %3851 = vsyncadd (%p4898_p9), %s807_s25, 4294967280  ;;  %p4899_p13 = pmov %p4895_p10 }
 0x11a   : > { %p4900_p0 = pmov %p4895_p10 }
 0x11b   : > { %3853 = dma.done.wait (%p4899_p13), [#allocation13], 16  }
 0x11c   : > { %3855 = vsyncadd (%p4900_p0), [#allocation13], 4294967280  ;;  %s4901_s2 = sld [smem:[#allocation28_spill]]  ;;  %s4902_s0 = sld [smem:[#allocation23_spill]] }
 0x11d   : > { %s4903_s12 = sld [smem:[#allocation27_spill]]  ;;  %s4905_s7 = sld [smem:[#allocation39_spill]] }
 0x11e   : > { %s4906_s22 = sld [smem:[#allocation41_spill]]  ;;  %s4907_s11 = sld [smem:[#allocation46_spill]] }
 0x11f   : > { %s4908_s13 = sld [smem:[#allocation47_spill]]  ;;  %s4909_s3 = sld [smem:[#allocation45_spill]] }
 0x120   : > { %s4910_s28 = sld [smem:[#allocation48_spill]]  ;;  %s4911_s1 = sld [smem:[#allocation49_spill]] }
 0x121   : > { %s4912_s9 = sld [smem:[#allocation51_spill]] }
 0x122   : > { %p921_p7 = scmp.lt.s32.totalorder %s4901_s2, 1 }
 0x123   : > { %p932_p8 = scmp.lt.s32.totalorder %s4903_s12, 1  ;;  %p2920_p4 = scmp.ne.s32.totalorder %s4903_s12, 0 }
 0x124   : > { %s4954_s2 = smov (!%p921_p7, %s4901_s2), 1  ;;  %v3917_v2 = vmov (!%p2920_p4), 0   ;;  %v2922_v13 = vld [vmem:[#allocation3] ss:$0 sm:$0xff] (!%p2920_p4) }
 0x125   : > { %s4399_s17 = scalar_select %p932_p8, %s4903_s12, 1 }
 0x126   : > { %s2915_s26 = sshll.u32 %s4954_s2, 3  ;;  %3413 = vset.pattern.permute.xlu1 (!%p2920_p4), %v3917_v2  ;;  %3414 = vset.pattern.permute.xlu0 (!%p2920_p4), %v3917_v2 }
 0x127   : > { %s924_s19 = scalar_lea.vmem %s4905_s7, %s2915_s26  ;;  %s931_s25 = scalar_lea.vmem %s4906_s22, %s2915_s26 }
 0x128   : > { %s3255_s10 = smul.u32 3, %s4399_s17  ;;  %s3040_s27 = sshll.u32 %s4399_s17, 6  ;;  %v4414_v0 = vld [vmem:[%s931_s25] sm:$0xff] }
 0x129   : > { %s4419_s15 = scalar_lea.vmem %s4907_s11, %s3040_s27  ;;  %s943_s21 = scalar_lea.vmem %s4908_s13, %s4399_s17  ;;  %v963_v1 = vld [vmem:[%s924_s19] sm:$0xff] (!%p2920_p4)  ;;  %994 = vperm.xlu1 (!%p2920_p4), %3413, %v4414_v0  }
 0x12a   : > { %s4428_s7 = scalar_lea.vmem %s4909_s3, %s3255_s10  ;;  %s946_s22 = scalar_lea.vmem %s4910_s28, %s4399_s17  ;;  %966 = vadd.xlane.f32.xlu0 (!%p2920_p4), %v963_v1 }
 0x12b   : > { %s949_s20 = scalar_lea.vmem %s4911_s1, %s4399_s17  ;;  %s2919_s4 = sshll.u32 %s4399_s17, 2 }
 0x12c   : > { %s4442_s23 = scalar_lea.vmem %s4912_s9, %s2919_s4  ;;  %s4913_s13 = sld [smem:[#allocation53_spill]] }
 0x12d   : > { %s4914_s10 = sand.u32 1, %s4902_s0   ;;  %962 = sbr.rel (%p2920_p4) target bundleno = 612 (0x264), region = 128 }
 0x12e   : > { %s4450_s5 = scalar_lea.vmem [#allocation15], %s4914_s10  ;;  %s4915_s0 = sld [smem:[#allocation42_spill]] (!%p2920_p4) }
 0x132   : > { %s956_s14 = scalar_lea.vmem %s4913_s13, %s4399_s17 }
 0x134   : > { %v2921_v11 = vld [vmem:[%s4915_s0] ss:$0 sm:$0xff] }
 0x1a8   : > { %v995_v15 = vpop.permute.xlu1 %994 }
 0x1b7   : > { %v967_v3 = vpop.xlane.xlu0 %966 }
 0x1b8   : > { %v969_v4 = vmul.f32 0.0078125, %v967_v3 }
 0x1ba   : > { %v970_v5 = vsub.f32 %v963_v1, %v969_v4 }
 0x1bc   : > { %v971_v6 = vmul.f32 %v970_v5, %v970_v5 }
 0x1be   : > { %972 = vadd.xlane.f32.xlu0 %v971_v6 }
 0x24b   : > { %v973_v7 = vpop.xlane.xlu0 %972 }
 0x24c   : > { %v974_v8 = vmul.f32 0.0078125, %v973_v7 }
 0x24e   : > { %v975_v9 = vadd.f32 1e-12, %v974_v8 }
 0x250   : > { %3415 = vrsqrt.f32 %v975_v9 }
 0x25a   : > { %v3416_v10 = vpop.eup %3415 }
 0x25b   : > { %v977_v12 = vmul.f32 %v3416_v10, %v970_v5 }
 0x25d   : > { %v984_v14 = vmul.f32 %v2921_v11, %v977_v12 }
 0x25f   : > { %v991_v16 = vadd.f32 %v2922_v13, %v984_v14 }
 0x261   : > { %v997_v17 = vmul.f32 %v995_v15, %v991_v16 }
 0x263   : > { %998 = vst [vmem:[#allocation2] sm:$0xff] %v997_v17 }
 0x264 PF: > { %v3418_v18 = vld [vmem:[%s4367_s8 + $0x4] ss:$12 sps:$4 sm:$0xff]   ;;  %v3420_v19 = vld [vmem:[%s4367_s8] ss:$12 sps:$4 sm:$0xff]   ;;  %v3918_v20 = vmov 0   ;;  %v3919_v37 = vmov 0.0   ;;  %v1035_v46 = vlaneseq }
 0x265   : > { %1210 = vmatprep.mubr.bf16.mxu0 %v3918_v20  ;;  %3417 = vset.pattern.permute.xlu0 %v3918_v20  ;;  %v3421_v21 = vld [vmem:[%s4367_s8 + $0x1c] ss:$12 sps:$4 sm:$0xff]   ;;  %v3423_v22 = vld [vmem:[%s4367_s8 + $0x18] ss:$12 sps:$4 sm:$0xff]   ;;  %v3424_v23 = vld [vmem:[%s4367_s8 + $0x34] ss:$12 sps:$4 sm:$0xff]  }
 0x266   : > { %1178 = vmatprep.subr.bf16.mxu0 %v3418_v18  ;;  %v3426_v24 = vld [vmem:[%s4367_s8 + $0x30] ss:$12 sps:$4 sm:$0xff]   ;;  %v3427_v25 = vld [vmem:[%s4367_s8 + $0x4c] ss:$12 sps:$4 sm:$0xff]   ;;  %v3429_v26 = vld [vmem:[%s4367_s8 + $0x48] ss:$12 sps:$4 sm:$0xff]   ;;  %3129 = vmatprep.subr.bf16.mxu1 %v3919_v37 }
 0x267   : > { %1179 = vmatpush1.bf16.msra.mxu0 %v3420_v19  ;;  %v3430_v27 = vld [vmem:[%s4367_s8 + $0x64] ss:$12 sps:$4 sm:$0xff]   ;;  %v3432_v28 = vld [vmem:[%s4367_s8 + $0x60] ss:$12 sps:$4 sm:$0xff]   ;;  %v3433_v29 = vld [vmem:[%s4367_s8 + $0x7c] ss:$12 sps:$4 sm:$0xff]  }
 0x268   : > { %1180 = vmatprep.subr.bf16.mxu0 %v3421_v21  ;;  %v3435_v30 = vld [vmem:[%s4367_s8 + $0x78] ss:$12 sps:$4 sm:$0xff]   ;;  %v3436_v31 = vld [vmem:[%s4367_s8 + $0x94] ss:$12 sps:$4 sm:$0xff]   ;;  %v3438_v32 = vld [vmem:[%s4367_s8 + $0x90] ss:$12 sps:$4 sm:$0xff]  }
 0x269   : > { %v3439_v33 = vld [vmem:[%s4367_s8 + $0xac] ss:$12 sps:$4 sm:$0xff]   ;;  %v3441_v34 = vld [vmem:[%s4367_s8 + $0xa8] ss:$12 sps:$4 sm:$0xff]   ;;  %vm3920_vm0 = vmmov 0   ;;  %v4503_v47 = vshrl.u32 %v1035_v46, 7 }
 0x26a   : > { %v4475_v35 = vld [vmem:[#allocation2] sm:$0xff]  ;;  %3145 = vmatprep.mubr.msk.bf16.mxu1 %vm3920_vm0, %v3919_v37  ;;  %v3443_v39 = vld [vmem:[%s4367_s8 + $0x20] ss:$12 sps:$4 sm:$0xff]   ;;  %vm1279_vm1 = vcmask 523264   ;;  %s4916_s3 = sld [smem:[#allocation40_spill]]  ;;  %vm1430_vm2 = vcmask 64512  }
 0x26b   : > { %1181 = vmatpush1.bf16.msra.mxu0 %v3423_v22  ;;  %v1000_v36 = vpack.c.bf16 %v4475_v35, %v4475_v35  ;;  %v3442_v38 = vld [vmem:[%s4367_s8 + $0x8] ss:$12 sps:$4 sm:$0xff]   ;;  %v3444_v40 = vld [vmem:[%s4367_s8 + $0x38] ss:$12 sps:$4 sm:$0xff]   ;;  %v3445_v41 = vld [vmem:[%s4367_s8 + $0x50] ss:$12 sps:$4 sm:$0xff]  }
 0x26c   : > { %1182 = vmatprep.subr.bf16.mxu0 %v3424_v23  ;;  %3130 = vmatpush3.bf16.msra.mxu1 %v3442_v38  ;;  %v3446_v42 = vld [vmem:[%s4367_s8 + $0x68] ss:$12 sps:$4 sm:$0xff]   ;;  %v3447_v43 = vld [vmem:[%s4367_s8 + $0x80] ss:$12 sps:$4 sm:$0xff]   ;;  %v3448_v44 = vld [vmem:[%s4367_s8 + $0x98] ss:$12 sps:$4 sm:$0xff]  }
 0x26d   : > { %3131 = vmatprep.subr.bf16.mxu1 %v3919_v37  ;;  %v3449_v45 = vld [vmem:[%s4367_s8 + $0xb0] ss:$12 sps:$4 sm:$0xff]   ;;  %v1037_v48 = vsub.s32 0, %v4503_v47  ;;  %v1033_v49 = vld [vmem:[%s4428_s7] sm:$0x7]  ;;  %v1041_v50 = vsub.s32 1, %v4503_v47 }
 0x26e   : > { %s3921_s8 = smov 64   ;;  %v1045_v60 = vsub.s32 2, %v4503_v47  ;;  %s4925_s27 = sld [smem:[#allocation27_spill]] }
 0x26f   : > { %1183 = vmatpush1.bf16.msra.mxu0 %v3426_v24  ;;  %v1038_v51 = vrot.slane %v1033_v49, %v1037_v48  ;;  %v1042_v52 = vrot.slane %v1033_v49, %v1041_v50 }
 0x270   : > { %1184 = vmatprep.subr.bf16.mxu0 %v3427_v25  ;;  %3132 = vmatpush3.bf16.msra.mxu1 %v3443_v39  ;;  %v1046_v62 = vrot.slane %v1033_v49, %v1045_v60  ;;  %s4917_s7 = scalar_lea.vmem %s4916_s3, %s4954_s2  ;;  %v3454_v39 = vld [vmem:[%s4419_s15 + $0x20] sm:$0xff]  }
 0x271   : > { %3133 = vmatprep.subr.bf16.mxu1 %v3919_v37  ;;  %v2947_v7 = vld [vmem:[%s4917_s7] ss:$0 sm:$0xff] }
 0x273   : > { %1185 = vmatpush1.bf16.msra.mxu0 %v3429_v26 }
 0x274   : > { %1186 = vmatprep.subr.bf16.mxu0 %v3430_v27  ;;  %3134 = vmatpush3.bf16.msra.mxu1 %v3444_v40  ;;  %p3034_p5 = scmp.ne.s32.totalorder %s4925_s27, 1 }
 0x275   : > { %3135 = vmatprep.subr.bf16.mxu1 %v3919_v37  ;;  %s4926_s18 = sld [smem:[#allocation56_spill]] (!%p3034_p5)  ;;  %vm3923_vm3 = vmmov (!%p3034_p5), 0  }
 0x277   : > { %1187 = vmatpush1.bf16.msra.mxu0 %v3432_v28 }
 0x278   : > { %1188 = vmatprep.subr.bf16.mxu0 %v3433_v29  ;;  %3136 = vmatpush3.bf16.msra.mxu1 %v3445_v41  ;;  %v3450_v29 = vld [vmem:[%s4419_s15] sm:$0xff]   ;;  %v3455_v41 = vld [vmem:[%s4419_s15 + $0x28] sm:$0xff]  }
 0x279   : > { %3137 = vmatprep.subr.bf16.mxu1 %v3919_v37 }
 0x27b   : > { %1189 = vmatpush1.bf16.msra.mxu0 %v3435_v30 }
 0x27c   : > { %1190 = vmatprep.subr.bf16.mxu0 %v3436_v31  ;;  %3138 = vmatpush3.bf16.msra.mxu1 %v3446_v42  ;;  %v3451_v31 = vld [vmem:[%s4419_s15 + $0x8] sm:$0xff]   ;;  %v3456_v42 = vld [vmem:[%s4419_s15 + $0x30] sm:$0xff]  }
 0x27d   : > { %3139 = vmatprep.subr.bf16.mxu1 %v3919_v37 }
 0x27f   : > { %1191 = vmatpush1.bf16.msra.mxu0 %v3438_v32  ;;  %v3452_v32 = vld [vmem:[%s4419_s15 + $0x10] sm:$0xff]  }
 0x280   : > { %1192 = vmatprep.subr.bf16.mxu0 %v3439_v33  ;;  %3140 = vmatpush3.bf16.msra.mxu1 %v3447_v43  ;;  %v3453_v33 = vld [vmem:[%s4419_s15 + $0x18] sm:$0xff]  }
 0x281   : > { %3141 = vmatprep.subr.bf16.mxu1 %v3919_v37  ;;  %v3457_v43 = vld [vmem:[%s4419_s15 + $0x38] sm:$0xff]  }
 0x283   : > { %1193 = vmatpush1.bf16.msra.mxu0 %v3441_v34 }
 0x284   : > { %3149 = vmatprep.subr.mxu0 %v3919_v37  ;;  %3142 = vmatpush3.bf16.msra.mxu1 %v3448_v44 }
 0x285   : > { %3143 = vmatprep.subr.bf16.mxu1 %v3919_v37 }
 0x286   : > { %1211 = vmatmul.mubr.bf16.vlgmr.msra.gmra.mrb[0].mxu0 %v1000_v36 }
 0x287   : > { %3151 = vmatprep.mubr.msk.f32.mxu0 %vm3920_vm0, %v3919_v37 }
 0x288   : > { %3144 = vmatpush3.bf16.msra.mxu1 %v3449_v45 }
 0x289   : > { %3154 = vmatprep.subr.mxu1 %v3919_v37 }
 0x28b   : > { %3146 = vmatmul.mubr.bf16.vlgmr.msra.gmra.mrb[0].mxu1 %v1000_v36 }
 0x28c   : > { %3156 = vmatprep.mubr.msk.f32.mxu1 %vm3920_vm0, %v3919_v37 }
 0x359   : > { %v1212_v53 = vpop.f32.mrb[0].mxu0 }
 0x35a   : > { %v1213_v54 = vadd.f32 %v1212_v53, %v1038_v51  ;;  %v1214_v55 = vpop.f32.mrb[1].mxu0 }
 0x35b   : > { %v1215_v56 = vadd.f32 %v1214_v55, %v1042_v52  ;;  %v1216_v57 = vpop.f32.mrb[2].mxu0 }
 0x35c   : > { %v1217_v58 = vpop.f32.mrb[3].mxu0  ;;  %v1263_v59 = vmul.f32 0.125, %v1213_v54  ;;  %v2964_v57 = vld [vmem:[%s943_s21] ss:$0 sm:$0xff] }
 0x35d   : > { %1266 = vrot.lane.b32.xlu0 %v1215_v56, %s3921_s8  ;;  %3150 = vmatpush3.xpose.msk.msra.mxu0 %vm1279_vm1, %v1215_v56 }
 0x35e   : > { %3159 = vmatprep.subr.mxu0 %v3919_v37  ;;  %v1253_v2 = vpop.f32.mrb[0].mxu1 }
 0x35f   : > { %v1254_v3 = vadd.f32 %v1253_v2, %v1046_v62  ;;  %v3147_v4 = vpop.f32.mrb[1].mxu1  ;;  %v3460_v2 = vld [vmem:[%s4374_s6 + $0x4] ss:$16 sps:$4 sm:$0xff]  }
 0x360   : > { %3152 = vmatmul.mubr.msk.f32.vlgmr.msra.gmra.mrb[4].mxu0 %vm1279_vm1, %v1263_v59  ;;  %v1256_v5 = vpop.f32.mrb[2].mxu1  ;;  %v3463_v4 = vld [vmem:[%s4374_s6 + $0xc] ss:$16 sps:$4 sm:$0xff]  }
 0x361   : > { %1260 = vrot.lane.b32.xlu0 %v1213_v54, %s3921_s8  ;;  %3161 = vmatprep.mubr.msk.f32.mxu0 %vm3920_vm0, %v3919_v37  ;;  %v3148_v6 = vpop.f32.mrb[3].mxu1  ;;  %v3466_v5 = vld [vmem:[%s4374_s6 + $0x24] ss:$16 sps:$4 sm:$0xff]  }
 0x362   : > { %3160 = vmatpush3.msra.mxu0 %v1254_v3  ;;  %v3469_v6 = vld [vmem:[%s4374_s6 + $0x2c] ss:$16 sps:$4 sm:$0xff]  }
 0x363   : > { %3169 = vmatprep.subr.bf16.mxu0 %v3919_v37 }
 0x3cf   : > { %v1267_v61 = vpop.permute.xlu0 %1266 }
 0x3d0   : > { %3155 = vmatpush3.xpose.msk.msra.mxu1 %vm1279_vm1, %v1267_v61 }
 0x3d1   : > { %3164 = vmatprep.subr.mxu1 %v3919_v37 }
 0x3d3   : > { %v1261_v63 = vpop.permute.xlu0 %1260 }
 0x3d4   : > { %v1264_v1 = vmul.f32 0.125, %v1261_v63 }
 0x3d6   : > { %3157 = vmatmul.mubr.msk.f32.vlgmr.msra.gmra.mrb[4].mxu1 %vm1279_vm1, %v1264_v1  ;;  %v3458_v1 = vld [vmem:[%s4374_s6] ss:$16 sps:$4 sm:$0xff]  }
 0x3d7   : > { %3166 = vmatprep.mubr.msk.f32.mxu1 %vm3920_vm0, %v3919_v37 }
 0x433   : > { %v1351_v8 = vpop.f32.mrb[4].mxu0 }
 0x434   : > { %v1352_v9 = vadd.f32 %v2947_v7, %v1351_v8  ;;  %v3153_v10 = vpop.f32.mrb[5].mxu0  ;;  %v3467_v8 = vld [vmem:[%s4374_s6 + $0x28] ss:$16 sps:$4 sm:$0xff]  }
 0x435   : > { %v3470_v10 = vld [vmem:[%s4374_s6 + $0x40] ss:$16 sps:$4 sm:$0xff]  }
 0x436   : > { %v1431_v11 = vsel %vm1430_vm2, %v1352_v9, -inf }
 0x437   : > { %1432 = vmax.xlane.f32.xlu1 %v1431_v11  ;;  %v3473_v11 = vld [vmem:[%s4374_s6 + $0x48] ss:$16 sps:$4 sm:$0xff]  }
 0x4a9   : > { %v1426_v12 = vpop.f32.mrb[4].mxu1 }
 0x4aa   : > { %v1427_v13 = vadd.f32 %v2947_v7, %v1426_v12  ;;  %v3158_v14 = vpop.f32.mrb[5].mxu1  ;;  %v3464_v7 = vld [vmem:[%s4374_s6 + $0x20] ss:$16 sps:$4 sm:$0xff]  }
 0x4ac   : > { %v1434_v15 = vsel %vm1430_vm2, %v1427_v13, -inf }
 0x4ad   : > { %1435 = vmax.xlane.f32.xlu1 %v1434_v15 }
 0x4c4   : > { %v1433_v16 = vpop.xlane.xlu1 %1432 }
 0x4c5   : > { %v1437_v17 = vsub.f32 %v1352_v9, %v1433_v16  ;;  %v3472_v9 = vld [vmem:[%s4374_s6 + $0x44] ss:$16 sps:$4 sm:$0xff]  }
 0x4c6   : > { %v3478_v16 = vld [vmem:[%s4374_s6 + $0x64] ss:$16 sps:$4 sm:$0xff]  }
 0x4c7   : > { %v1439_v18 = vmul.f32 1.442695, %v1437_v17  ;;  %v3481_v17 = vld [vmem:[%s4374_s6 + $0x6c] ss:$16 sps:$4 sm:$0xff]  }
 0x4c9   : > { %3538 = vpow2.f32 %v1439_v18  ;;  %v3476_v18 = vld [vmem:[%s4374_s6 + $0x60] ss:$16 sps:$4 sm:$0xff]  }
 0x4d3   : > { %v3539_v19 = vpop.eup %3538 }
 0x4d4   : > { %v1443_v21 = vsel %vm1430_vm2, %v3539_v19, 0.0 }
 0x4d5   : > { %1444 = vadd.xlane.f32.xlu0 %v1443_v21  ;;  %v3484_v21 = vld [vmem:[%s4374_s6 + $0x84] ss:$16 sps:$4 sm:$0xff]  }
 0x53a   : > { %v1436_v22 = vpop.xlane.xlu1 %1435 }
 0x53b   : > { %v1438_v23 = vsub.f32 %v1427_v13, %v1436_v22  ;;  %v3487_v22 = vld [vmem:[%s4374_s6 + $0x8c] ss:$16 sps:$4 sm:$0xff]  }
 0x53d   : > { %v1441_v24 = vmul.f32 1.442695, %v1438_v23  ;;  %v3482_v23 = vld [vmem:[%s4374_s6 + $0x80] ss:$16 sps:$4 sm:$0xff]  }
 0x53f   : > { %3540 = vpow2.f32 %v1441_v24  ;;  %v3485_v24 = vld [vmem:[%s4374_s6 + $0x88] ss:$16 sps:$4 sm:$0xff]  }
 0x549   : > { %v3541_v25 = vpop.eup %3540 }
 0x54a   : > { %v1446_v26 = vsel %vm1430_vm2, %v3541_v25, 0.0 }
 0x54b   : > { %1447 = vadd.xlane.f32.xlu1 %v1446_v26  ;;  %v3493_v26 = vld [vmem:[%s4374_s6 + $0xac] ss:$16 sps:$4 sm:$0xff]  }
 0x55c   : > { %1269 = vrot.lane.b32.xlu1 %v1254_v3, %s3921_s8  ;;  %v3461_v3 = vld [vmem:[%s4374_s6 + $0x8] ss:$16 sps:$4 sm:$0xff]  }
 0x562   : > { %v1445_v27 = vpop.xlane.xlu0 %1444 }
 0x563   : > { %3542 = vrcp.f32 %v1445_v27  ;;  %v3488_v27 = vld [vmem:[%s4374_s6 + $0xa0] ss:$16 sps:$4 sm:$0xff]  }
 0x56d   : > { %v3543_v28 = vpop.eup %3542 }
 0x56e   : > { %v1451_v30 = vmul.f32 %v3543_v28, %v3539_v19  ;;  %v3479_v19 = vld [vmem:[%s4374_s6 + $0x68] ss:$16 sps:$4 sm:$0xff]  }
 0x56f   : > { %v3491_v28 = vld [vmem:[%s4374_s6 + $0xa8] ss:$16 sps:$4 sm:$0xff]  }
 0x570   : > { %3162 = vmatmul.mubr.msk.f32.vlgmr.msra.gmra.mrb[6].mxu0 %vm1430_vm2, %v1451_v30  ;;  %v3499_v30 = vld [vmem:[%s4374_s6 + $0xcc] ss:$16 sps:$4 sm:$0xff]  }
 0x571   : > { %3170 = vmatpush3.bf16.msra.mxu0 %v3450_v29  ;;  %3177 = vmatprep.mubr.msk.bf16.mxu0 %vm3920_vm0, %v3919_v37  ;;  %v3496_v29 = vld [vmem:[%s4374_s6 + $0xc4] ss:$16 sps:$4 sm:$0xff]  }
 0x572   : > { %3171 = vmatprep.subr.bf16.mxu0 %v3919_v37 }
 0x575   : > { %3172 = vmatpush3.bf16.msra.mxu0 %v3451_v31  ;;  %v3494_v31 = vld [vmem:[%s4374_s6 + $0xc0] ss:$16 sps:$4 sm:$0xff]  }
 0x576   : > { %3173 = vmatprep.subr.bf16.mxu0 %v3919_v37 }
 0x579   : > { %3174 = vmatpush3.bf16.msra.mxu0 %v3452_v32  ;;  %v3497_v32 = vld [vmem:[%s4374_s6 + $0xc8] ss:$16 sps:$4 sm:$0xff]  }
 0x57a   : > { %3175 = vmatprep.subr.bf16.mxu0 %v3919_v37 }
 0x57d   : > { %3176 = vmatpush3.bf16.msra.mxu0 %v3453_v33  ;;  %v3502_v33 = vld [vmem:[%s4374_s6 + $0xe4] ss:$16 sps:$4 sm:$0xff]  }
 0x57e   : > { %2004 = vmatprep.subr.bf16.mxu0 %v3460_v2  ;;  %v3520_v2 = vld [vmem:[%s4376_s30 + $0x18] sm:$0xff]  }
 0x5d8   : > { %v1448_v34 = vpop.xlane.xlu1 %1447 }
 0x5d9   : > { %3544 = vrcp.f32 %v1448_v34  ;;  %v3500_v34 = vld [vmem:[%s4374_s6 + $0xe0] ss:$16 sps:$4 sm:$0xff]  }
 0x5dc   : > { %v1270_v36 = vpop.permute.xlu1 %1269 }
 0x5dd   : > { %3165 = vmatpush3.msra.mxu1 %v1270_v36  ;;  %v3503_v36 = vld [vmem:[%s4374_s6 + $0xe8] ss:$16 sps:$4 sm:$0xff]  }
 0x5de   : > { %3181 = vmatprep.subr.bf16.mxu1 %v3919_v37 }
 0x5e3   : > { %v3545_v38 = vpop.eup %3544 }
 0x5e4   : > { %v1452_v40 = vmul.f32 %v3545_v38, %v3541_v25  ;;  %v3490_v25 = vld [vmem:[%s4374_s6 + $0xa4] ss:$16 sps:$4 sm:$0xff]   ;;  %v3505_v38 = vld [vmem:[%s4374_s6 + $0xec] ss:$16 sps:$4 sm:$0xff]  }
 0x5e6   : > { %3167 = vmatmul.mubr.msk.f32.vlgmr.msra.gmra.mrb[6].mxu1 %vm1430_vm2, %v1452_v40 }
 0x5e7   : > { %3182 = vmatpush3.bf16.msra.mxu1 %v3454_v39  ;;  %3189 = vmatprep.mubr.msk.bf16.mxu1 %vm3920_vm0, %v3919_v37 }
 0x5e8   : > { %3183 = vmatprep.subr.bf16.mxu1 %v3919_v37 }
 0x5eb   : > { %3184 = vmatpush3.bf16.msra.mxu1 %v3455_v41 }
 0x5ec   : > { %3185 = vmatprep.subr.bf16.mxu1 %v3919_v37 }
 0x5ef   : > { %3186 = vmatpush3.bf16.msra.mxu1 %v3456_v42 }
 0x5f0   : > { %3187 = vmatprep.subr.bf16.mxu1 %v3919_v37 }
 0x5f3   : > { %3188 = vmatpush3.bf16.msra.mxu1 %v3457_v43  ;;  %v2965_v43 = vld [vmem:[%s946_s22] ss:$0 sm:$0xff]  ;;  %s4922_s22 = sld [smem:[#allocation38_spill]] }
 0x5f4   : > { %2045 = vmatprep.subr.bf16.mxu1 %v3463_v4  ;;  %v3522_v4 = vld [vmem:[%s4376_s30 + $0x60] sm:$0xff]  }
 0x5f9   : > { %s4923_s17 = scalar_lea.vmem [#allocation11], %s4922_s22  ;;  %s4924_s11 = scalar_lea.vmem [#allocation12], %s4922_s22 }
 0x643   : > { %v1522_v44 = vpop.f32.mrb[6].mxu0 }
 0x644   : > { %v1599_v45 = vpack.c.bf16 %v1522_v44, %v1522_v44  ;;  %v3163_v46 = vpop.f32.mrb[7].mxu0 }
 0x646   : > { %3178 = vmatmul.mubr.msk.bf16.vlgmr.msra.gmra.mrb[8].mxu0 %vm1279_vm1, %v1599_v45  ;;  %v2966_v45 = vld [vmem:[%s949_s20] ss:$0 sm:$0xff] }
 0x647   : > { %2036 = vmatprep.mubr.bf16.mxu0 %v3918_v20  ;;  %2005 = vmatpush1.bf16.msra.mxu0 %v3458_v1  ;;  %v3519_v1 = vld [vmem:[%s4376_s30 + $0xd8] sm:$0xff]  }
 0x648   : > { %2006 = vmatprep.subr.bf16.mxu0 %v3466_v5  ;;  %v3523_v5 = vld [vmem:[%s4376_s30 + $0xe0] sm:$0xff]  }
 0x64b   : > { %2007 = vmatpush1.bf16.msra.mxu0 %v3464_v7  ;;  %v3525_v7 = vld [vmem:[%s4376_s30 + $0xa0] sm:$0xff]  }
 0x64c   : > { %2008 = vmatprep.subr.bf16.mxu0 %v3472_v9  ;;  %v3527_v9 = vld [vmem:[%s4376_s30 + $0xe8] sm:$0xff]  }
 0x64f   : > { %2009 = vmatpush1.bf16.msra.mxu0 %v3470_v10  ;;  %v3529_v10 = vld [vmem:[%s4376_s30 + $0xa8] sm:$0xff]  }
 0x650   : > { %2010 = vmatprep.subr.bf16.mxu0 %v3478_v16  ;;  %v3535_v16 = vld [vmem:[%s4376_s30 + $0xf8] sm:$0xff]  }
 0x653   : > { %2011 = vmatpush1.bf16.msra.mxu0 %v3476_v18  ;;  %v3537_v18 = vld [vmem:[%s4376_s30 + $0xb8] sm:$0xff]  }
 0x654   : > { %2012 = vmatprep.subr.bf16.mxu0 %v3484_v21  ;;  %v1838_v21 = vsub.s32 3, %v4503_v47 }
 0x657   : > { %2013 = vmatpush1.bf16.msra.mxu0 %v3482_v23 }
 0x658   : > { %2014 = vmatprep.subr.bf16.mxu0 %v3490_v25 }
 0x65b   : > { %2015 = vmatpush1.bf16.msra.mxu0 %v3488_v27 }
 0x65c   : > { %2016 = vmatprep.subr.bf16.mxu0 %v3496_v29 }
 0x65f   : > { %2017 = vmatpush1.bf16.msra.mxu0 %v3494_v31 }
 0x660   : > { %2018 = vmatprep.subr.bf16.mxu0 %v3502_v33 }
 0x663   : > { %2019 = vmatpush1.bf16.msra.mxu0 %v3500_v34 }
 0x6b9   : > { %v1595_v49 = vpop.f32.mrb[6].mxu1 }
 0x6ba   : > { %v1600_v51 = vpack.c.bf16 %v1595_v49, %v1595_v49  ;;  %v3168_v52 = vpop.f32.mrb[7].mxu1 }
 0x6bb   : > { %v3506_v52 = vld [vmem:[%s4376_s30 + $0x40] sm:$0xff]  }
 0x6bc   : > { %3190 = vmatmul.mubr.msk.bf16.vlgmr.msra.gmra.mrb[8].mxu1 %vm1279_vm1, %v1600_v51  ;;  %3068 = vmatprep.subr.bf16.mxu0 %v3506_v52 }
 0x6bd   : > { %2077 = vmatprep.mubr.bf16.mxu1 %v3918_v20  ;;  %2046 = vmatpush1.bf16.msra.mxu1 %v3461_v3  ;;  %v3521_v3 = vld [vmem:[%s4376_s30 + $0x98] sm:$0xff]  }
 0x6be   : > { %2047 = vmatprep.subr.bf16.mxu1 %v3469_v6  ;;  %v3524_v6 = vld [vmem:[%s4376_s30 + $0x20] sm:$0xff]  }
 0x6c1   : > { %2048 = vmatpush1.bf16.msra.mxu1 %v3467_v8  ;;  %v3526_v8 = vld [vmem:[%s4376_s30 + $0x68] sm:$0xff]  }
 0x719   : > { %v1678_v37 = vpop.f32.mrb[8].mxu0 }
 0x71a   : > { %v3179_v53 = vpop.f32.mrb[9].mxu0 }
 0x71b   : > { %v1681_v54 = vpop.f32.mrb[10].mxu0  ;;  %v3508_v53 = vld [vmem:[%s4376_s30] sm:$0xff]  }
 0x71c   : > { %v3180_v55 = vpop.f32.mrb[11].mxu0  ;;  %v3509_v54 = vld [vmem:[%s4376_s30 + $0x80] sm:$0xff]  }
 0x71d   : > { %v3510_v55 = vld [vmem:[%s4376_s30 + $0x48] sm:$0xff]  }
 0x78f   : > { %v1745_v56 = vpop.f32.mrb[8].mxu1 }
 0x790   : > { %v1751_v58 = vadd.f32 %v1745_v56, %v1678_v37  ;;  %v3191_v59 = vpop.f32.mrb[9].mxu1  ;;  %v3507_v37 = vld [vmem:[%s4376_s30 + $0xc0] sm:$0xff]   ;;  %v3511_v56 = vld [vmem:[%s4376_s30 + $0xc8] sm:$0xff]  }
 0x791   : > { %v1748_v61 = vpop.f32.mrb[10].mxu1  ;;  %v3514_v59 = vld [vmem:[%s4376_s30 + $0x50] sm:$0xff]  }
 0x792   : > { %v1759_v62 = vadd.f32 %v2964_v57, %v1751_v58  ;;  %v3192_v20 = vpop.f32.mrb[11].mxu1  ;;  %v3512_v57 = vld [vmem:[%s4376_s30 + $0x8] sm:$0xff]   ;;  %v3515_v61 = vld [vmem:[%s4376_s30 + $0xd0] sm:$0xff]  }
 0x793   : > { %v3513_v58 = vld [vmem:[%s4376_s30 + $0x88] sm:$0xff]   ;;  %v3517_v20 = vld [vmem:[%s4376_s30 + $0x90] sm:$0xff]  }
 0x794   : > { %v1760_v63 = vadd.f32 %v1759_v62, %v4475_v35  ;;  %v3475_v35 = vld [vmem:[%s4374_s6 + $0x4c] ss:$16 sps:$4 sm:$0xff]   ;;  %v3516_v62 = vld [vmem:[%s4376_s30 + $0x10] sm:$0xff]  }
 0x795   : > { %2049 = vmatprep.subr.bf16.mxu1 %v3475_v35  ;;  %v3528_v35 = vld [vmem:[%s4376_s30 + $0x28] sm:$0xff]  }
 0x796   : > { %1763 = vadd.xlane.f32.xlu1 %v1760_v63  ;;  %2050 = vmatpush1.bf16.msra.mxu1 %v3473_v11  ;;  %v3530_v11 = vld [vmem:[%s4376_s30 + $0x70] sm:$0xff]  }
 0x797   : > { %2051 = vmatprep.subr.bf16.mxu1 %v3481_v17  ;;  %v3536_v17 = vld [vmem:[%s4376_s30 + $0x38] sm:$0xff]  }
 0x79a   : > { %2052 = vmatpush1.bf16.msra.mxu1 %v3479_v19  ;;  %v1822_v19 = vld [vmem:[%s4442_s23] sm:$0xf] }
 0x79b   : > { %2053 = vmatprep.subr.bf16.mxu1 %v3487_v22  ;;  %v1827_v22 = vrot.slane %v1822_v19, %v1037_v48  ;;  %v1835_v23 = vrot.slane %v1822_v19, %v1045_v60  ;;  %v1839_v25 = vrot.slane %v1822_v19, %v1838_v21 }
 0x79e   : > { %2054 = vmatpush1.bf16.msra.mxu1 %v3485_v24  ;;  %v1831_v24 = vrot.slane %v1822_v19, %v1041_v50 }
 0x79f   : > { %2055 = vmatprep.subr.bf16.mxu1 %v3493_v26 }
 0x7a2   : > { %2056 = vmatpush1.bf16.msra.mxu1 %v3491_v28 }
 0x7a3   : > { %2057 = vmatprep.subr.bf16.mxu1 %v3499_v30 }
 0x7a6   : > { %2058 = vmatpush1.bf16.msra.mxu1 %v3497_v32 }
 0x7a7   : > { %2059 = vmatprep.subr.bf16.mxu1 %v3505_v38 }
 0x7aa   : > { %2060 = vmatpush1.bf16.msra.mxu1 %v3503_v36 }
 0x7ab   : > { %3090 = vmatprep.subr.bf16.mxu1 %v3507_v37 }
 0x823   : > { %v1764_v12 = vpop.xlane.xlu1 %1763 }
 0x824   : > { %v1766_v13 = vmul.f32 0.0078125, %v1764_v12  ;;  %v3531_v12 = vld [vmem:[%s4376_s30 + $0xf0] sm:$0xff]  }
 0x826   : > { %v1767_v14 = vsub.f32 %v1760_v63, %v1766_v13  ;;  %v3518_v63 = vld [vmem:[%s4376_s30 + $0x58] sm:$0xff]   ;;  %v3532_v13 = vld [vmem:[%s4376_s30 + $0x30] sm:$0xff]  }
 0x828   : > { %v1768_v15 = vmul.f32 %v1767_v14, %v1767_v14 }
 0x82a   : > { %1769 = vadd.xlane.f32.xlu0 %v1768_v15  ;;  %v3534_v15 = vld [vmem:[%s4376_s30 + $0x78] sm:$0xff]  }
 0x8b7   : > { %v1770_v39 = vpop.xlane.xlu0 %1769 }
 0x8b8   : > { %v1771_v40 = vmul.f32 0.0078125, %v1770_v39 }
 0x8ba   : > { %v1772_v41 = vadd.f32 1e-12, %v1771_v40 }
 0x8bc   : > { %3546 = vrsqrt.f32 %v1772_v41 }
 0x8c6   : > { %v3547_v42 = vpop.eup %3546 }
 0x8c7   : > { %v1774_v44 = vmul.f32 %v3547_v42, %v1767_v14  ;;  %v3533_v14 = vld [vmem:[%s4376_s30 + $0xb0] sm:$0xff]  }
 0x8c9   : > { %v1781_v46 = vmul.f32 %v2965_v43, %v1774_v44 }
 0x8cb   : > { %v4611_v49 = vadd.f32 %v2966_v45, %v1781_v46 }
 0x8cd   : > { %v1789_v51 = vpack.c.bf16 %v4611_v49, %v4611_v49 }
 0x8cf   : > { %2037 = vmatmul.mubr.bf16.vlgmr.msra.gmra.mrb[12].mxu0 %v1789_v51  ;;  %2078 = vmatmul.mubr.bf16.vlgmr.msra.gmra.mrb[12].mxu1 %v1789_v51 }
 0x8d0   : > { %3069 = vmatpush3.bf16.msra.mxu0 %v3508_v53  ;;  %3091 = vmatpush3.bf16.msra.mxu1 %v3509_v54 }
 0x8d1   : > { %3070 = vmatprep.subr.bf16.mxu0 %v3510_v55  ;;  %3092 = vmatprep.subr.bf16.mxu1 %v3511_v56 }
 0x8d4   : > { %3071 = vmatpush3.bf16.msra.mxu0 %v3512_v57  ;;  %3093 = vmatpush3.bf16.msra.mxu1 %v3513_v58 }
 0x8d5   : > { %3072 = vmatprep.subr.bf16.mxu0 %v3514_v59  ;;  %3094 = vmatprep.subr.bf16.mxu1 %v3515_v61 }
 0x8d8   : > { %3073 = vmatpush3.bf16.msra.mxu0 %v3516_v62  ;;  %3095 = vmatpush3.bf16.msra.mxu1 %v3517_v20 }
 0x8d9   : > { %3074 = vmatprep.subr.bf16.mxu0 %v3518_v63  ;;  %3096 = vmatprep.subr.bf16.mxu1 %v3519_v1 }
 0x8dc   : > { %3075 = vmatpush3.bf16.msra.mxu0 %v3520_v2  ;;  %3097 = vmatpush3.bf16.msra.mxu1 %v3521_v3 }
 0x8dd   : > { %3076 = vmatprep.subr.bf16.mxu0 %v3522_v4  ;;  %3098 = vmatprep.subr.bf16.mxu1 %v3523_v5 }
 0x8e0   : > { %3077 = vmatpush3.bf16.msra.mxu0 %v3524_v6  ;;  %3099 = vmatpush3.bf16.msra.mxu1 %v3525_v7 }
 0x8e1   : > { %3078 = vmatprep.subr.bf16.mxu0 %v3526_v8  ;;  %3100 = vmatprep.subr.bf16.mxu1 %v3527_v9 }
 0x8e4   : > { %3079 = vmatpush3.bf16.msra.mxu0 %v3528_v35  ;;  %3101 = vmatpush3.bf16.msra.mxu1 %v3529_v10 }
 0x8e5   : > { %3080 = vmatprep.subr.bf16.mxu0 %v3530_v11  ;;  %3102 = vmatprep.subr.bf16.mxu1 %v3531_v12 }
 0x8e8   : > { %3081 = vmatpush3.bf16.msra.mxu0 %v3532_v13  ;;  %3103 = vmatpush3.bf16.msra.mxu1 %v3533_v14 }
 0x8e9   : > { %3082 = vmatprep.subr.bf16.mxu0 %v3534_v15  ;;  %3104 = vmatprep.subr.bf16.mxu1 %v3535_v16 }
 0x8ec   : > { %3083 = vmatpush3.bf16.msra.mxu0 %v3536_v17  ;;  %3105 = vmatpush3.bf16.msra.mxu1 %v3537_v18  ;;  %v2999_v17 = vld [vmem:[%s956_s14] ss:$0 sm:$0xff] }
 0x9a2   : > { %v2038_v26 = vpop.f32.mrb[12].mxu0  ;;  %v2079_v27 = vpop.f32.mrb[12].mxu1 }
 0x9a3   : > { %v2039_v28 = vadd.f32 %v2038_v26, %v1827_v22  ;;  %v2080_v29 = vadd.f32 %v2079_v27, %v1835_v23  ;;  %v2040_v30 = vpop.f32.mrb[13].mxu0  ;;  %v2081_v31 = vpop.f32.mrb[13].mxu1 }
 0x9a4   : > { %v2041_v32 = vadd.f32 %v2040_v30, %v1831_v24  ;;  %v2082_v33 = vadd.f32 %v2081_v31, %v1839_v25  ;;  %v2042_v34 = vpop.f32.mrb[14].mxu0  ;;  %v2083_v36 = vpop.f32.mrb[14].mxu1 }
 0x9a5   : > { %v2086_v38 = vmul.f32 %v2039_v28, %v2039_v28  ;;  %v2088_v39 = vmul.f32 %v2080_v29, %v2080_v29  ;;  %v2043_v48 = vpop.f32.mrb[15].mxu0  ;;  %v2084_v40 = vpop.f32.mrb[15].mxu1 }
 0x9a6   : > { %v2087_v41 = vmul.f32 %v2041_v32, %v2041_v32  ;;  %v2089_v60 = vmul.f32 %v2082_v33, %v2082_v33  ;;  %v3032_v48 = vld [vmem:[%s4923_s17] ss:$0 sm:$0xff] }
 0x9a7   : > { %v2090_v42 = vmul.f32 %v2086_v38, %v2039_v28  ;;  %v2092_v47 = vmul.f32 %v2088_v39, %v2080_v29 }
 0x9a8   : > { %v2091_v50 = vmul.f32 %v2087_v41, %v2041_v32  ;;  %v2093_v43 = vmul.f32 %v2089_v60, %v2082_v33  ;;  %v3033_v41 = vld [vmem:[%s4924_s11] ss:$0 sm:$0xff] }
 0x9a9   : > { %v2094_v44 = vmul.f32 0.044715, %v2090_v42  ;;  %v2096_v45 = vmul.f32 0.044715, %v2092_v47 }
 0x9aa   : > { %v2095_v46 = vmul.f32 0.044715, %v2091_v50  ;;  %v2097_v51 = vmul.f32 0.044715, %v2093_v43  ;;  %v2509_v50 = vld [vmem:[%s4926_s18 + $0x8] sm:$0xff] (!%p3034_p5)  ;;  %v2510_v43 = vld [vmem:[%s4926_s18 + $0x10] sm:$0xff] (!%p3034_p5) }
 0x9ab   : > { %v2098_v52 = vadd.f32 %v2094_v44, %v2039_v28  ;;  %v2100_v37 = vadd.f32 %v2096_v45, %v2080_v29  ;;  %v3922_v44 = vmov (!%p3034_p5), 0.0|0.0  }
 0x9ac   : > { %v2099_v53 = vadd.f32 %v2095_v46, %v2041_v32  ;;  %v2101_v54 = vadd.f32 %v2097_v51, %v2082_v33  ;;  %3228 = vmatprep.subr.bf16.mxu0 (!%p3034_p5), %v3922_v44  ;;  %v2511_v46 = vld [vmem:[%s4926_s18 + $0x18] sm:$0xff] (!%p3034_p5)  ;;  %v3924_v51 = vmov (!%p3034_p5), 0.0  }
 0x9ad   : > { %v2102_v55 = vmul.f32 0.7978846, %v2098_v52  ;;  %v2104_v56 = vmul.f32 0.7978846, %v2100_v37  ;;  %v3232_v52 = vpack.c.bf16 (!%p3034_p5), %v2511_v46, %v2510_v43  ;;  %v2512_v37 = vld [vmem:[%s4926_s18 + $0x20] sm:$0xff] (!%p3034_p5) }
 0x9ae   : > { %v2103_v57 = vmul.f32 0.7978846, %v2099_v53  ;;  %v2105_v58 = vmul.f32 0.7978846, %v2101_v54  ;;  %v2513_v53 = vld [vmem:[%s4926_s18 + $0x28] sm:$0xff] (!%p3034_p5) }
 0x9af   : > { %3548 = vtanh.f32 %v2102_v55  ;;  %v3235_v54 = vpack.c.bf16 (!%p3034_p5), %v2513_v53, %v2512_v37  ;;  %v2514_v55 = vld [vmem:[%s4926_s18 + $0x30] sm:$0xff] (!%p3034_p5) }
 0x9b0   : > { %3550 = vtanh.f32 %v2104_v56  ;;  %v2515_v56 = vld [vmem:[%s4926_s18 + $0x38] sm:$0xff] (!%p3034_p5) }
 0x9b1   : > { %3552 = vtanh.f32 %v2103_v57  ;;  %v3238_v57 = vpack.c.bf16 (!%p3034_p5), %v2515_v56, %v2514_v55 }
 0x9b2   : > { %3554 = vtanh.f32 %v2105_v58  ;;  %v2516_v58 = vld [vmem:[%s4926_s18 + $0x40] sm:$0xff] (!%p3034_p5) }
 0x9b9   : > { %v3549_v59 = vpop.eup %3548 }
 0x9ba   : > { %v3551_v61 = vpop.eup %3550  ;;  %v2110_v62 = vadd.f32 1.0, %v3549_v59  ;;  %v2517_v59 = vld [vmem:[%s4926_s18 + $0x48] sm:$0xff] (!%p3034_p5) }
 0x9bb   : > { %v3553_v20 = vpop.eup %3552  ;;  %v2112_v63 = vadd.f32 1.0, %v3551_v61  ;;  %v3241_v61 = vpack.c.bf16 (!%p3034_p5), %v2517_v59, %v2516_v58 }
 0x9bc   : > { %v3555_v1 = vpop.eup %3554  ;;  %v2111_v2 = vadd.f32 1.0, %v3553_v20  ;;  %v2114_v3 = vmul.f32 0.5, %v2110_v62  ;;  %v2518_v62 = vld [vmem:[%s4926_s18 + $0x50] sm:$0xff] (!%p3034_p5)  ;;  %v2519_v20 = vld [vmem:[%s4926_s18 + $0x58] sm:$0xff] (!%p3034_p5) }
 0x9bd   : > { %v2113_v4 = vadd.f32 1.0, %v3555_v1  ;;  %v2116_v5 = vmul.f32 0.5, %v2112_v63  ;;  %v3244_v63 = vpack.c.bf16 (!%p3034_p5), %v2519_v20, %v2518_v62  ;;  %v2520_v1 = vld [vmem:[%s4926_s18 + $0x60] sm:$0xff] (!%p3034_p5) }
 0x9be   : > { %v2115_v6 = vmul.f32 0.5, %v2111_v2  ;;  %v2118_v8 = vmul.f32 %v2114_v3, %v2039_v28  ;;  %v2521_v2 = vld [vmem:[%s4926_s18 + $0x68] sm:$0xff] (!%p3034_p5) }
 0x9bf   : > { %v2117_v7 = vmul.f32 0.5, %v2113_v4  ;;  %v2120_v35 = vmul.f32 %v2116_v5, %v2080_v29  ;;  %v3247_v3 = vpack.c.bf16 (!%p3034_p5), %v2521_v2, %v2520_v1  ;;  %v2522_v4 = vld [vmem:[%s4926_s18 + $0x70] sm:$0xff] (!%p3034_p5)  ;;  %v2523_v5 = vld [vmem:[%s4926_s18 + $0x78] sm:$0xff] (!%p3034_p5) }
 0x9c0   : > { %v2119_v9 = vmul.f32 %v2115_v6, %v2041_v32  ;;  %v2122_v13 = vpack.c.bf16 %v2118_v8, %v2118_v8  ;;  %v3250_v6 = vpack.c.bf16 (!%p3034_p5), %v2523_v5, %v2522_v4  ;;  %v2524_v8 = vld [vmem:[#allocation14] sm:$0x1] (!%p3034_p5) }
 0x9c1   : > { %v2121_v10 = vmul.f32 %v2117_v7, %v2082_v33  ;;  %v2124_v14 = vpack.c.bf16 %v2120_v35, %v2120_v35 }
 0x9c2   : > { %v2123_v11 = vpack.c.bf16 %v2119_v9, %v2119_v9 }
 0x9c3   : > { %v2125_v12 = vpack.c.bf16 %v2121_v10, %v2121_v10 }
 0x9c4   : > { %2421 = vmatprep.mubr.bf16.mxu0 %v2123_v11 }
 0x9c5   : > { %2461 = vmatprep.mubr.bf16.mxu1 %v2125_v12  ;;  %2422 = vmatmul.mubr.bf16.vlgmr.msra.gmra.mrb[16].mxu0 %v2122_v13 }
 0x9c6   : > { %2462 = vmatmul.mubr.bf16.vlgmr.msra.gmra.mrb[16].mxu1 %v2124_v14  ;;  %3225 = vmatprep.mubr.msk.f32.mxu0 (!%p3034_p5), %vm3923_vm3, %v3924_v51 }
 0xa98   : > { %v3084_v15 = vpop.f32.mrb[16].mxu0 }
 0xa99   : > { %v3106_v16 = vpop.f32.mrb[16].mxu1  ;;  %v3085_v18 = vpop.f32.mrb[17].mxu0 }
 0xa9a   : > { %v3086_v19 = vadd.f32 %v3085_v18, %v3084_v15  ;;  %v3107_v21 = vpop.f32.mrb[17].mxu1  ;;  %v3087_v22 = vpop.f32.mrb[18].mxu0 }
 0xa9b   : > { %v3108_v23 = vadd.f32 %v3107_v21, %v3106_v16  ;;  %v3109_v24 = vpop.f32.mrb[18].mxu1  ;;  %v3088_v25 = vpop.f32.mrb[19].mxu0 }
 0xa9c   : > { %v2424_v26 = vadd.f32 %v3086_v19, %v2999_v17  ;;  %v3110_v27 = vpop.f32.mrb[19].mxu1 }
 0xa9e   : > { %v2464_v28 = vadd.f32 %v3108_v23, %v2424_v26 }
 0xaa0   : > { %v2469_v29 = vadd.f32 %v2464_v28, %v4611_v49 }
 0xaa2   : > { %2472 = vadd.xlane.f32.xlu0 %v2469_v29 }
 0xb2f   : > { %v2473_v30 = vpop.xlane.xlu0 %2472 }
 0xb30   : > { %v2474_v31 = vmul.f32 0.0078125, %v2473_v30 }
 0xb32   : > { %v2475_v32 = vsub.f32 %v2469_v29, %v2474_v31 }
 0xb34   : > { %v2476_v33 = vmul.f32 %v2475_v32, %v2475_v32 }
 0xb36   : > { %2477 = vadd.xlane.f32.xlu0 %v2476_v33 }
 0xb4c   : > { %2499 = vperm.xlu0 %3417, %v4414_v0   ;;  %v2508_v0 = vld [vmem:[%s4926_s18] sm:$0xff] (!%p3034_p5) }
 0xb4d   : > { %v3229_v45 = vpack.c.bf16 (!%p3034_p5), %v2509_v50, %v2508_v0 }
 0xb4f   : > { %3230 = vmatpush3.bf16.msra.mxu0 (!%p3034_p5), %v3229_v45 }
 0xb50   : > { %3231 = vmatprep.subr.bf16.mxu0 (!%p3034_p5), %v3922_v44 }
 0xb53   : > { %3233 = vmatpush3.bf16.msra.mxu0 (!%p3034_p5), %v3232_v52 }
 0xb54   : > { %3234 = vmatprep.subr.bf16.mxu0 (!%p3034_p5), %v3922_v44 }
 0xb57   : > { %3236 = vmatpush3.bf16.msra.mxu0 (!%p3034_p5), %v3235_v54 }
 0xb58   : > { %3237 = vmatprep.subr.bf16.mxu0 (!%p3034_p5), %v3922_v44 }
 0xb5b   : > { %3239 = vmatpush3.bf16.msra.mxu0 (!%p3034_p5), %v3238_v57 }
 0xb5c   : > { %3240 = vmatprep.subr.bf16.mxu0 (!%p3034_p5), %v3922_v44 }
 0xb5f   : > { %3242 = vmatpush3.bf16.msra.mxu0 (!%p3034_p5), %v3241_v61 }
 0xb60   : > { %3243 = vmatprep.subr.bf16.mxu0 (!%p3034_p5), %v3922_v44 }
 0xb63   : > { %3245 = vmatpush3.bf16.msra.mxu0 (!%p3034_p5), %v3244_v63 }
 0xb64   : > { %3246 = vmatprep.subr.bf16.mxu0 (!%p3034_p5), %v3922_v44 }
 0xb67   : > { %3248 = vmatpush3.bf16.msra.mxu0 (!%p3034_p5), %v3247_v3 }
 0xb68   : > { %3249 = vmatprep.subr.bf16.mxu0 (!%p3034_p5), %v3922_v44 }
 0xb6b   : > { %3251 = vmatpush3.bf16.msra.mxu0 (!%p3034_p5), %v3250_v6 }
 0xbc3   : > { %v2478_v34 = vpop.xlane.xlu0 %2477 }
 0xbc4   : > { %v2479_v36 = vmul.f32 0.0078125, %v2478_v34 }
 0xbc6   : > { %v2480_v38 = vadd.f32 1e-12, %v2479_v36 }
 0xbc8   : > { %3556 = vrsqrt.f32 %v2480_v38 }
 0xbcb   : > { %v2500_v49 = vpop.permute.xlu0 %2499 }
 0xbd2   : > { %v3557_v39 = vpop.eup %3556 }
 0xbd3   : > { %v2482_v40 = vmul.f32 %v3557_v39, %v2475_v32 }
 0xbd5   : > { %v2489_v60 = vmul.f32 %v3032_v48, %v2482_v40  ;;  %2507 = sbr.rel (%p3034_p5) target bundleno = 3252 (0xcb4), region = 132 }
 0xbd7   : > { %v2496_v42 = vadd.f32 %v3033_v41, %v2489_v60 }
 0xbd9   : > { %v2502_v47 = vmul.f32 %v2500_v49, %v2496_v42 }
 0xbdb   : > { %2503 = vst [vmem:[#allocation2] sm:$0xff] %v2502_v47  ;;  %v2526_v7 = vrot.slane (!%p3034_p5), %v2502_v47, 7 }
 0xbdd   : > { %3226 = vmatmul.mubr.f32.vlgmr.msra.gmra.mrb[0].mxu0 %v2526_v7 }
 0xcb0   : > { %v2594_v9 = vpop.f32.mrb[0].mxu0 }
 0xcb1   : > { %v2595_v35 = vadd.f32 %v2594_v9, %v2524_v8  ;;  %v3227_v10 = vpop.f32.mrb[1].mxu0 }
 0xcb3   : > { %2598 = vst [vmem:[%s4450_s5] sm:$0x1] %v2595_v35 }
 0xcb4 PF: > { %s4927_s14 = sld [smem:[#allocation28_spill]]  ;;  %s4928_s10 = sld [smem:[#allocation23_spill]] }
 0xcb5   : > { %s4929_s1 = sld [smem:[#allocation32_spill]]  ;;  %s4930_s12 = sld [smem:[#allocation58_spill]] }
 0xcb6   : > { %s2612_s3 = sshll.u32 %s4450_s5, 4  ;;  %s3925_s29 = smov [#allocation15]   ;;  %s2613_s3 = int_to_ptr.vmem [resolvable:$true] %s2612_s3 }
 0xcb7   : > { %s3764_s2 = scalar_lea.vmem %s2613_s3, 16  ;;  %s3768_s21 = sshll.u32 %s3925_s29, 4  ;;  %s3769_s21 = int_to_ptr.vmem [resolvable:$false] %s3768_s21 }
 0xcb8   : > { %p3765_p11 = scmp.ne.s32.totalorder %s2613_s3, %s3764_s2  ;;  %s3770_s26 = scalar_lea.vmem %s3769_s21, 32 }
 0xcb9   : > { %p3771_p6 = scmp.lt.s32.totalorder %s2613_s3, %s3769_s21  ;;  %p3772_p10 = scmp.lt.s32.totalorder %s3770_s26, %s3764_s2 }
 0xcba   : > { %s3035_s24 = sshll.u32 %s4927_s14, 4  ;;  %s4931_s7 = sand.u32 1, %s4928_s10  }
 0xcbb   : > { %s4720_s19 = scalar_lea.hbm %s4930_s12, %s3035_s24  ;;  %s2600_s15 = scalar_lea.sflag [#allocation5], %s4931_s7 }
 0xcbc   : > { %p4932_p1 = scmp.ne.s32.totalorder %s4929_s1, 0  ;;  %p3773_p12 = por %p3772_p10, %p3771_p6 }
 0xcbe   : > { %p3766_p2 = pnand %p3765_p11, %p4932_p1 }
 0xcc0   : > { %p3767_p3 = pneg %p3766_p2 }
 0xcc2   : > { %p3774_p9 = pnand %p3773_p12, %p3767_p3 }
 0xcc4   : > { %3777 = shalt.err (!%p3774_p9)
}
 0xcc5   : > { %s3778_s5 = scalar_lea.hbm %s4720_s19, 16  ;;  %s3782_s25 = scalar_lea.hbm %s4930_s12, 32 }
 0xcc6   : > { %p3779_p13 = scmp.ne.s32.totalorder %s4720_s19, %s3778_s5  ;;  %p3783_p8 = scmp.lt.u32.totalorder %s4720_s19, %s4930_s12 }
 0xcc7   : > { %p3784_p4 = scmp.lt.u32.totalorder %s3782_s25, %s3778_s5  ;;  %p3786_p11 = scmp.lt.u32.totalorder %s3778_s5, %s4720_s19 }
 0xcc8   : > { %p3780_p0 = pnand %p3779_p13, %p4932_p1 }
 0xcc9   : > { %p3785_p5 = por %p3784_p4, %p3783_p8 }
 0xcca   : > { %p3781_p7 = pneg %p3780_p0 }
 0xccb   : > { %p3787_p2 = por %p3786_p11, %p3785_p5 }
 0xccd   : > { %p3788_p3 = pnand %p3787_p2, %p3781_p7 }
 0xccf   : > { %3791 = shalt.err (!%p3788_p3)
}
 0xcd0   : > { %3274 = dma.vmem_to_hbm [thread:$0]  (%p4932_p1), %s2613_s3, 16, %s4720_s19, %s2600_s15  }
 0xcd1 PF: > { %s4933_s23 = sld [smem:[#allocation31_spill]]  ;;  %s4934_s30 = sld [smem:[#allocation22_spill]] }
 0xcd2   : > { %s4935_s22 = sld [smem:[#allocation33_spill]] }
 0xcd7   : > { %p3308_p6 = scmp.ge.s32.totalorder %s4933_s23, 2  ;;  %s2624_s17 = sand.u32 1, %s4934_s30  }
 0xcd8   : > { %p4936_p10 = scmp.ne.s32.totalorder %s4935_s22, 0  ;;  %s2625_s11 = scalar_lea.sflag [#allocation5], %s2624_s17 }
 0xcda   : > { %p3300_p12 = pnand %p3308_p6, %p4936_p10 }
 0xcdc   : > { %3857 = dma.done.wait (!%p3300_p12), %s2625_s11, 16  }
 0xcdd   : > { %3859 = vsyncadd (!%p3300_p12), %s2625_s11, 4294967280  ;;  %s42_s3 = sadd.s32 1, %s4933_s23   ;;  %s4937_s0 = sld [smem:[#allocation23_spill]] }
 0xcde   : > { %p39_p9 = scmp.ge.s32.totalorder %s42_s3, 6   ;;  %s4938_s30 = sld [smem:[#allocation24_spill]] }
 0xcdf   : > { %s4939_s20 = sld [smem:[#allocation37_spill]]  ;;  %s4940_s21 = sld [smem:[#allocation25_spill]] }
 0xce0   : > { %s4941_s1 = sld [smem:[#allocation26_spill]]  ;;  %s4942_s22 = sld [smem:[#allocation36_spill]] }
 0xce1   : > { %s4943_s2 = sld [smem:[#allocation29_spill]]  ;;  %s4944_s23 = sld [smem:[#allocation30_spill]] }
 0xce2   : > { %s4945_s24 = sld [smem:[#allocation34_spill]]  ;;  %s4946_s25 = sld [smem:[#allocation35_spill]] }
 0xce3   :  { %41 = sbr.rel (!%p39_p9) target bundleno = 35 (0x23), region = 236 }
 0xcea   :  { %2629 = vsyncpa [#allocation4], 1 }
 0xceb   :  { %2631 = vsyncpa [#allocation4 + $0x1], 1 }
 0xcec   :  { %2632 = vsyncpa [#allocation7], 1 }
 0xced   :  { %2634 = vsyncpa [#allocation7 + $0x1], 1 }
 0xcee   :  { %2635 = vsyncpa [#allocation10], 1 }
 0xcef   :  { %2637 = vsyncpa [#allocation10 + $0x1], 1 }
 0xcf0   :  { %2638 = vsyncpa [#allocation13], 1 }
 0xcf1   :  { %2640 = vsyncpa [#allocation13 + $0x1], 1 }
 0xcf2   :  { %2641 = vsyncpa [#allocation5], 1 }
 0xcf3   :  { %2643 = vsyncpa [#allocation5 + $0x1], 1 }

</bundles_post_ra>
